<compile_context>
chip_gen: v5e
topology: v5e:2x2
jax: 0.10.0
libtpu: 0.0.40
codegen_flags: <defaults>
</compile_context>

<pallas_src>
import functools

import jax
import jax.numpy as jnp
from jax.experimental import pallas as pl
from jax.experimental.pallas import tpu as pltpu


def _round_up(x, m):
    return (x + m - 1) // m * m


def _choose_batch_tile(batch, block_batch):
    """Batch tile (multiple of 8 f32 sublanes).

    Small batches: single (or near-single) step, never bigger than needed.
    Large batches: at least 2 grid steps so both v7x TensorCores get work, capped
    at block_batch rows to amortize per-step overhead without blowing VMEM.
    """
    if batch <= 512:
        return min(_round_up(batch, 8), block_batch)
    return max(256, min(block_batch, _round_up(pl.cdiv(batch, 2), 256)))


def _ivn_mlp_kernel(x_ref, w1_ref, b1_ref, w2_ref, b2_ref, out_ref):
    # linear1: bf16 MXU operands, f32 accumulation; bias added in f32 on the VPU.
    x = x_ref[...].astype(jnp.bfloat16)
    h = jnp.dot(x, w1_ref[...], preferred_element_type=jnp.float32)
    h = jnp.maximum(h + b1_ref[...], 0.0)          # f32 bias + relu (VPU slack)
    # linear2: bf16 MXU operands, f32 accumulation; f32 bias; f32 store (32 lanes).
    z = jnp.dot(h.astype(jnp.bfloat16), w2_ref[...],
                preferred_element_type=jnp.float32)
    out_ref[...] = z + b2_ref[...]


def prepare_params(w1, b1, w2, b2):
    """Feature-last f32 params -> kernel layout.

    w1: (F, 256)  b1: (256,)  w2: (256, H)  b2: (H,)
    Weights are cast to bf16 (halves the one-time weight DMA); biases stay f32
    so no bias quantization (review correctness note).  No lane padding needed:
    the kernel's out_spec is the true H columns.
    """
    return {
        "w1": w1.astype(jnp.bfloat16),                    # (F, 256) bf16
        "b1": b1.reshape(1, -1).astype(jnp.float32),      # (1, 256) f32
        "w2": w2.astype(jnp.bfloat16),                    # (256, H) bf16
        "b2": b2.reshape(1, -1).astype(jnp.float32),      # (1, H)   f32
        "hidden_channels": int(w2.shape[1]),
    }


@functools.partial(jax.jit, static_argnames=("block_batch",))
def fused_initial_value_mlp(static, w1, b1, w2, b2, *, block_batch=4096):
    """z0 = relu(static @ W1 + b1) @ W2 + b2, fused in one Pallas kernel.

    No wrapper-side concat / pad / slice: the only XLA ops around the kernel are
    the (no-op) dtype guard on `static`.
    """
    static = static.astype(jnp.float32)
    batch, in_features = static.shape
    hidden = w2.shape[1]

    bt = _round_up(_choose_batch_tile(batch, block_batch), 8)
    grid = (pl.cdiv(batch, bt),)   # partial last block clamped by Pallas

    out = pl.pallas_call(
        _ivn_mlp_kernel,
        out_shape=jax.ShapeDtypeStruct((batch, hidden), jnp.float32),
        grid_spec=pltpu.PrefetchScalarGridSpec(
            num_scalar_prefetch=0,
            grid=grid,
            in_specs=[
                # Per-tile activations (f32, cast to bf16 inside the kernel).
                pl.BlockSpec((bt, in_features), lambda i: (i, 0)),
                # Constant index maps -> weights/biases stay VMEM-resident across
                # every grid step (single DMA, no per-step re-fetch).
                pl.BlockSpec(w1.shape, lambda i: (0, 0)),
                pl.BlockSpec(b1.shape, lambda i: (0, 0)),
                pl.BlockSpec(w2.shape, lambda i: (0, 0)),
                pl.BlockSpec(b2.shape, lambda i: (0, 0)),
            ],
            # True-H (e.g. 32-lane) f32 output: minimal writeback bytes, no
            # post-kernel slice.  OOB rows of the partial last block are dropped.
            out_specs=pl.BlockSpec((bt, hidden), lambda i: (i, 0)),
        ),
        compiler_params=pltpu.CompilerParams(
            dimension_semantics=("parallel",),     # batch steps shard across TCs
            vmem_limit_bytes=32 * 1024 * 1024),
    )(static, w1, b1, w2, b2)

    return out


def initial_value_network_forward(times, terminal_time, coeffs, final_index,
                                  params):
    """Mirrors InitialValueNetwork.forward."""
    *cde_coeffs, static = coeffs
    # Note: for tiny batches (~tens of rows) this op should be folded into the
    # downstream solver kernel (weights are ~20 KiB of VMEM-resident operands)
    # rather than paying a separate launch; kept as a standalone kernel here.
    z0 = fused_initial_value_mlp(
        static, params["w1"], params["b1"], params["w2"], params["b2"])
    # TODO(synk): `self.model(times, terminal_time, cde_coeffs, final_index, z0=z0)`
    # is an arbitrary wrapped NeuralCDE solver with no generic Pallas equivalent;
    # we return the computed initial state z0 instead.
    return z0


if __name__ == "__main__":
    key = jax.random.PRNGKey(0)
    kp1, kp2, kp3, kp4, kc0, kc1, ks = jax.random.split(key, 7)

    intensity = True
    hidden_channels = 32
    # Not a multiple of the 512-row tile -> exercises the clamped partial last
    # block (review item: no wrapper-side zero pad) and a 2-step "parallel" grid.
    batch = 520
    seq = 8
    in_features = 7 if intensity else 5

    # torch.nn.Linear default init: U(-1/sqrt(fan_in), 1/sqrt(fan_in)),
    # stored feature-last (transposed vs torch's (out, in)).
    s1 = 1.0 / float(in_features) ** 0.5
    s2 = 1.0 / 256.0 ** 0.5
    w1 = jax.random.uniform(kp1, (in_features, 256), jnp.float32, -s1, s1)
    b1 = jax.random.uniform(kp2, (256,), jnp.float32, -s1, s1)
    w2 = jax.random.uniform(kp3, (256, hidden_channels), jnp.float32, -s2, s2)
    b2 = jax.random.uniform(kp4, (hidden_channels,), jnp.float32, -s2, s2)
    params = prepare_params(w1, b1, w2, b2)

    # Synthetic inputs consistent with the forward signature.
    times = jnp.linspace(0.0, 1.0, seq, dtype=jnp.float32)
    terminal_time = jnp.float32(1.0)
    coeff_a = jax.random.normal(kc0, (batch, seq - 1, in_features), jnp.float32)
    coeff_b = jax.random.normal(kc1, (batch, seq - 1, in_features), jnp.float32)
    static = jax.random.normal(ks, (batch, in_features), jnp.float32)
    coeffs = (coeff_a, coeff_b, static)
    final_index = jnp.full((batch,), seq - 1, dtype=jnp.int32)

    z0 = initial_value_network_forward(times, terminal_time, coeffs,
                                       final_index, params)
    jax.block_until_ready(z0)
    assert z0.shape == (batch, hidden_channels), z0.shape
    assert z0.dtype == jnp.float32, z0.dtype

    # Reference 1: identical numeric recipe in plain JAX
    # (bf16 matmul operands, f32 accumulation, f32 bias adds).
    h_ref = jnp.dot(static.astype(jnp.bfloat16), params["w1"],
                    preferred_element_type=jnp.float32) + params["b1"]
    h_ref = jnp.maximum(h_ref, 0.0)
    ref_bf16 = jnp.dot(h_ref.astype(jnp.bfloat16), params["w2"],
                       preferred_element_type=jnp.float32) + params["b2"]
    assert jnp.allclose(z0, ref_bf16, atol=2e-3, rtol=2e-3), \
        "mismatch vs bf16-recipe ref"

    # Reference 2: full-f32 PyTorch semantics (looser tol: bf16 weight cast).
    ref_f32 = jnp.maximum(static @ w1 + b1, 0.0) @ w2 + b2
    assert jnp.allclose(z0, ref_f32, atol=2e-2, rtol=2e-2), "mismatch vs f32 ref"

    print("KERNEL_OK")
</pallas_src>

<mosaic_0001>
module attributes {stable_mosaic.version = 11 : i64} {
  func.func @_ivn_mlp_kernel(%arg0: i32, %arg1: memref<512x7xf32, #tpu.memory_space<vmem>>, %arg2: memref<7x256xbf16, #tpu.memory_space<vmem>>, %arg3: memref<1x256xf32, #tpu.memory_space<vmem>>, %arg4: memref<256x32xbf16, #tpu.memory_space<vmem>>, %arg5: memref<1x32xf32, #tpu.memory_space<vmem>>, %arg6: memref<512x32xf32, #tpu.memory_space<vmem>>) attributes {dimension_semantics = [#tpu.dimension_semantics<parallel>], iteration_bounds = array<i64: 2>, scalar_prefetch = 0 : i64, scratch_operands = 0 : i64, tpu.core_type = #tpu.core_type<tc>, window_params = [{transform_indices = @transform_0, window_bounds = array<i64: 512, 7>}, {pipeline_mode = #tpu.pipeline_mode<synchronous>, transform_indices = @transform_1, window_bounds = array<i64: 7, 256>}, {pipeline_mode = #tpu.pipeline_mode<synchronous>, transform_indices = @transform_2, window_bounds = array<i64: 1, 256>}, {pipeline_mode = #tpu.pipeline_mode<synchronous>, transform_indices = @transform_3, window_bounds = array<i64: 256, 32>}, {pipeline_mode = #tpu.pipeline_mode<synchronous>, transform_indices = @transform_4, window_bounds = array<i64: 1, 32>}, {transform_indices = @transform_5, window_bounds = array<i64: 512, 32>}]} {
    %c0 = arith.constant 0 : index
    %c0_0 = arith.constant 0 : index
    %0 = vector.load %arg1[%c0, %c0_0] : memref<512x7xf32, #tpu.memory_space<vmem>>, vector<512x7xf32>
    %1 = arith.truncf %0 : vector<512x7xf32> to vector<512x7xbf16>
    %c0_1 = arith.constant 0 : index
    %c0_2 = arith.constant 0 : index
    %2 = vector.load %arg2[%c0_1, %c0_2] : memref<7x256xbf16, #tpu.memory_space<vmem>>, vector<7x256xbf16>
    %cst = arith.constant dense<0.000000e+00> : vector<512x256xf32>
    %3 = tpu.matmul %1, %2, %cst {dimension_numbers = #tpu.dot_dimension_numbers<[1], [0], [0], [1], [0, 0, 1, 1], [], []>} : vector<512x7xbf16>, vector<7x256xbf16>, vector<512x256xf32> -> vector<512x256xf32>
    %c0_3 = arith.constant 0 : index
    %c0_4 = arith.constant 0 : index
    %4 = vector.load %arg3[%c0_3, %c0_4] : memref<1x256xf32, #tpu.memory_space<vmem>>, vector<1x256xf32>
    %5 = vector.broadcast %4 : vector<1x256xf32> to vector<512x256xf32>
    %6 = arith.addf %3, %5 : vector<512x256xf32>
    %cst_5 = arith.constant 0.000000e+00 : f32
    %7 = vector.broadcast %cst_5 : f32 to vector<512x256xf32>
    %8 = arith.maximumf %6, %7 : vector<512x256xf32>
    %9 = arith.truncf %8 : vector<512x256xf32> to vector<512x256xbf16>
    %c0_6 = arith.constant 0 : index
    %c0_7 = arith.constant 0 : index
    %10 = vector.load %arg4[%c0_6, %c0_7] : memref<256x32xbf16, #tpu.memory_space<vmem>>, vector<256x32xbf16>
    %cst_8 = arith.constant dense<0.000000e+00> : vector<512x32xf32>
    %11 = tpu.matmul %9, %10, %cst_8 {dimension_numbers = #tpu.dot_dimension_numbers<[1], [0], [0], [1], [0, 0, 1, 1], [], []>} : vector<512x256xbf16>, vector<256x32xbf16>, vector<512x32xf32> -> vector<512x32xf32>
    %c0_9 = arith.constant 0 : index
    %c0_10 = arith.constant 0 : index
    %12 = vector.load %arg5[%c0_9, %c0_10] : memref<1x32xf32, #tpu.memory_space<vmem>>, vector<1x32xf32>
    %13 = vector.broadcast %12 : vector<1x32xf32> to vector<512x32xf32>
    %14 = arith.addf %11, %13 : vector<512x32xf32>
    %c0_11 = arith.constant 0 : index
    %c0_12 = arith.constant 0 : index
    %15 = vector.load %arg6[%c0_11, %c0_12] : memref<512x32xf32, #tpu.memory_space<vmem>>, vector<512x32xf32>
    tpu.vector_store %arg6[%c0_11, %c0_12], %14 {strides = array<i32>} : memref<512x32xf32, #tpu.memory_space<vmem>>, vector<512x32xf32>,
    return
  }
  func.func @transform_0(%arg0: i32) -> (i32, i32) {
    %c0_i32 = arith.constant 0 : i32
    %c0_i32_0 = arith.constant 0 : i32
    return %arg0, %c0_i32 : i32, i32
  }
  func.func @transform_1(%arg0: i32) -> (i32, i32) {
    %c0_i32 = arith.constant 0 : i32
    %c0_i32_0 = arith.constant 0 : i32
    %c0_i32_1 = arith.constant 0 : i32
    return %c0_i32, %c0_i32_0 : i32, i32
  }
  func.func @transform_2(%arg0: i32) -> (i32, i32) {
    %c0_i32 = arith.constant 0 : i32
    %c0_i32_0 = arith.constant 0 : i32
    %c0_i32_1 = arith.constant 0 : i32
    return %c0_i32, %c0_i32_0 : i32, i32
  }
  func.func @transform_3(%arg0: i32) -> (i32, i32) {
    %c0_i32 = arith.constant 0 : i32
    %c0_i32_0 = arith.constant 0 : i32
    %c0_i32_1 = arith.constant 0 : i32
    return %c0_i32, %c0_i32_0 : i32, i32
  }
  func.func @transform_4(%arg0: i32) -> (i32, i32) {
    %c0_i32 = arith.constant 0 : i32
    %c0_i32_0 = arith.constant 0 : i32
    %c0_i32_1 = arith.constant 0 : i32
    return %c0_i32, %c0_i32_0 : i32, i32
  }
  func.func @transform_5(%arg0: i32) -> (i32, i32) {
    %c0_i32 = arith.constant 0 : i32
    %c0_i32_0 = arith.constant 0 : i32
    return %arg0, %c0_i32 : i32, i32
  }
}

</mosaic_0001>

<bundles_post_ra>
// kernel: fused_initial_value_mlp.1
= control target key start
LH: loop header
LB: loop body
LE: loop exit
PB: predicated region body
PF: predicated region fallthrough
CT: control target
= control target key end

     0   :  { %s2248_s18 = smov 0   ;;  %s2250_s19 = smov 0   ;;  %s2948_s0 = inlined_call_operand.vmem [shape: f32[520,7], index: 0, kind: input, shape index: {}]   ;;  %s2949_s1 = inlined_call_operand.vmem [shape: bf16[7,256], index: 1, kind: input, shape index: {}]   ;;  %s2950_s2 = inlined_call_operand.vmem [shape: f32[1,256], index: 2, kind: input, shape index: {}]   ;;  %s2951_s3 = inlined_call_operand.vmem [shape: bf16[256,32], index: 3, kind: input, shape index: {}]   ;;  %s2952_s4 = inlined_call_operand.vmem [shape: f32[1,32], index: 4, kind: input, shape index: {}]   ;;  %s2953_s5 = inlined_call_operand.vmem [shape: f32[520,32], index: 5, kind: output, shape index: {}]  }
   0x1   :  { %s2252_s20 = smov 0  }
   0x2 LB: > { %s2261_s21 = sadd.s32 4294967295, %s2183_s20   ;;  %s2263_s22 = sadd.s32 1, %s2183_s20   ;;  %s2183_s20 = sphi %s2252_s20, %s2962_s20   ;;  %s2179_s19 = sphi %s2250_s19, %s2961_s19   ;;  %s2175_s18 = sphi %s2248_s18, %s2960_s18  }
   0x3   : > { %s129_s23 = ssub.s32 %s2183_s20, %s2263_s22  ;;  %s132_s24 = sadd.s32 1, %s2179_s19 }
   0x4   : > { %p130_p0 = scmp.eq.s32.totalorder %s129_s23, 0  ;;  %p142_p1 = scmp.ne.s32.totalorder %s2179_s19, %s2175_s18 }
   0x5   : > { %p143_p2 = scmp.eq.s32.totalorder %s2261_s21, 1  ;;  %p1870_p3 = scmp.ge.s32.totalorder %s2183_s20, 1 }
   0x6   : > { %s2271_s25 = scalar_select %p130_p0, %s2179_s19, %s132_s24  }
   0x7   : > { %p2273_p4 = por %p143_p2, %p142_p1  ;;  %p196_p5 = scmp.lt.s32.totalorder %s2183_s20, 3 }
   0x9   : > { %p197_p6 = pnand %p1870_p3, %p196_p5 }
   0xa   : > { %s2281_s29 = sshll.u32 (!%p197_p6), %s2261_s21, 6  ;;  %s224_s10 = sand.u32 (!%p197_p6), 1, %s2175_s18  }
   0xb   : > { %200 = sbr.rel (%p197_p6) target bundleno = 871 (0x367), region = 40  ;;  %p232_p7 = scmp.lt.s32.totalorder (!%p197_p6), %s2281_s29, 64 }
   0xc   : > { %s1871_s13 = sshll.u32 (!%p197_p6), %s224_s10, 9 }
   0xd   : > { %s2462_s18 = scalar_lea.vmem (!%p197_p6), [#allocation2], %s1871_s13  }
  0x10   : > { %v343_v0 = vld [vmem:[%s2949_s1] sm:$0xff]  ;;  %vm452_vm0 = vcmask 1042432   ;;  %vm453_vm1 = vcmask 1043456   ;;  %v2217_v2 = vmov 65535   ;;  %s233_s30 = scalar_select %p232_p7, %s2281_s29, 64  ;;  %vm355_vm2 = vcmask 56320  }
  0x11   : > { %v351_v1 = vunpack.c.l.b16 %v343_v0  ;;  %v454_v3 = vsel %vm452_vm0, 4294967295, %v2217_v2  ;;  %v352_v4 = vunpack.c.h.b16 %v343_v0  ;;  %v2026_v25 = vld [vmem:[%s2951_s3 + $0x38] sm:$0xff]  ;;  %v2025_v30 = vld [vmem:[%s2951_s3 + $0x30] sm:$0xff]  ;;  %v2024_v32 = vld [vmem:[%s2951_s3 + $0x28] sm:$0xff]  ;;  %vm1462_vm3 = vcmask 261120   ;;  %s1535_s15 = ssub.s32 (%p2273_p4), 65, %s2281_s29 }
  0x12   : > { %v455_v5 = vsel %vm453_vm1, %v454_v3, 0  ;;  %s1873_s6 = sshll.u32 %s233_s30, 3  ;;  %v2034_v26 = vld [vmem:[%s2951_s3 + $0x78] sm:$0xff]  ;;  %1124 = vmatpush.bf16.msra.mxu2 %v2026_v25  ;;  %v2033_v31 = vld [vmem:[%s2951_s3 + $0x70] sm:$0xff]  ;;  %v2032_v33 = vld [vmem:[%s2951_s3 + $0x68] sm:$0xff]  ;;  %s2035_s16 = sshll.u32 (%p2273_p4), %s2261_s21, 9 }
  0x13   : > { %v353_v6 = vpack.c.b16 %v351_v1, %v351_v1  ;;  %v354_v7 = vpack.c.b16 %v352_v4, %v352_v4  ;;  %s2288_s9 = scalar_lea.vmem %s2948_s0, %s1873_s6  ;;  %1293 = vmatpush.bf16.msra.mxu3 %v2034_v26  ;;  %v2023_v34 = vld [vmem:[%s2951_s3 + $0x20] sm:$0xff]  ;;  %v2022_v38 = vld [vmem:[%s2951_s3 + $0x18] sm:$0xff]  ;;  %v2021_v41 = vld [vmem:[%s2951_s3 + $0x10] sm:$0xff]  ;;  %p1536_p8 = scmp.lt.s32.totalorder (%p2273_p4), %s1535_s15, 64 }
  0x14   : > { %v247_v10 = vld [vmem:[%s2288_s9] sm:$0xff]  ;;  %v248_v11 = vld [vmem:[%s2288_s9 + $0x8] sm:$0xff]  ;;  %v249_v13 = vld [vmem:[%s2288_s9 + $0x10] sm:$0xff]  ;;  %s2813_s23 = scalar_lea.vmem (%p2273_p4), %s2953_s5, %s2035_s16  }
  0x15   : > { %v457_v8 = vand.u32 %v455_v5, %v353_v6  ;;  %v460_v9 = vand.u32 %v455_v5, %v354_v7  ;;  %v311_v12 = vpack.c.bf16 %v248_v11, %v247_v10  ;;  %v250_v14 = vld [vmem:[%s2288_s9 + $0x18] sm:$0xff]  ;;  %v251_v16 = vld [vmem:[%s2288_s9 + $0x20] sm:$0xff]  ;;  %v252_v17 = vld [vmem:[%s2288_s9 + $0x28] sm:$0xff] }
  0x16   : > { %v312_v15 = vpack.c.bf16 %v250_v14, %v249_v13  ;;  %v313_v18 = vpack.c.bf16 %v252_v17, %v251_v16  ;;  %v253_v19 = vld [vmem:[%s2288_s9 + $0x30] sm:$0xff]  ;;  %v254_v20 = vld [vmem:[%s2288_s9 + $0x38] sm:$0xff]  ;;  %v255_v22 = vld [vmem:[%s2288_s9 + $0x40] sm:$0xff]  ;;  %1125 = vmatpush.bf16.msra.mxu2 %v2025_v30 }
  0x17   : > { %469 = vmatpush.bf16.msra.mxu0 %v457_v8  ;;  %638 = vmatpush.bf16.msra.mxu1 %v460_v9  ;;  %v314_v21 = vpack.c.bf16 %v254_v20, %v253_v19  ;;  %v256_v23 = vld [vmem:[%s2288_s9 + $0x48] sm:$0xff]  ;;  %v257_v27 = vld [vmem:[%s2288_s9 + $0x50] sm:$0xff]  ;;  %v258_v28 = vld [vmem:[%s2288_s9 + $0x58] sm:$0xff] }
  0x18   : > { %v315_v24 = vpack.c.bf16 %v256_v23, %v255_v22  ;;  %v316_v29 = vpack.c.bf16 %v258_v28, %v257_v27  ;;  %1294 = vmatpush.bf16.msra.mxu3 %v2033_v31  ;;  %v2031_v35 = vld [vmem:[%s2951_s3 + $0x60] sm:$0xff]  ;;  %v260_v37 = vld [vmem:[%s2288_s9 + $0x68] sm:$0xff]  ;;  %v2030_v39 = vld [vmem:[%s2951_s3 + $0x58] sm:$0xff] }
  0x19   : > { %v259_v36 = vld [vmem:[%s2288_s9 + $0x60] sm:$0xff]  ;;  %v2029_v42 = vld [vmem:[%s2951_s3 + $0x50] sm:$0xff]  ;;  %v2020_v43 = vld [vmem:[%s2951_s3 + $0x8] sm:$0xff] }
  0x1a   : > { %1874 = vmatmul.msk.bf16.vlgmr.msra.gmra.mxu0 %vm355_vm2, %v311_v12  ;;  %1906 = vmatmul.msk.bf16.vlgmr.msra.gmra.mxu1 %vm355_vm2, %v311_v12  ;;  %v317_v40 = vpack.c.bf16 %v260_v37, %v259_v36  ;;  %v2028_v44 = vld [vmem:[%s2951_s3 + $0x48] sm:$0xff]  ;;  %v2019_v45 = vld [vmem:[%s2951_s3] sm:$0xff]  ;;  %v261_v47 = vld [vmem:[%s2288_s9 + $0x70] sm:$0xff] }
  0x1b   : > { %1126 = vmatpush.bf16.msra.mxu2 %v2024_v32  ;;  %v2027_v46 = vld [vmem:[%s2951_s3 + $0x40] sm:$0xff]  ;;  %v262_v48 = vld [vmem:[%s2288_s9 + $0x78] sm:$0xff]  ;;  %v264_v51 = vld [vmem:[%s2288_s9 + $0x88] sm:$0xff] }
  0x1c   : > { %1295 = vmatpush.bf16.msra.mxu3 %v2032_v33  ;;  %v318_v49 = vpack.c.bf16 %v262_v48, %v261_v47  ;;  %v263_v50 = vld [vmem:[%s2288_s9 + $0x80] sm:$0xff]  ;;  %v265_v4 = vld [vmem:[%s2288_s9 + $0x90] sm:$0xff]  ;;  %v266_v5 = vld [vmem:[%s2288_s9 + $0x98] sm:$0xff] }
  0x1d   : > { %v319_v52 = vpack.c.bf16 %v264_v51, %v263_v50  ;;  %v344_v53 = vld [vmem:[%s2950_s2] sm:$0x3]  ;;  %v320_v8 = vpack.c.bf16 %v266_v5, %v265_v4  ;;  %v268_v22 = vld [vmem:[%s2288_s9 + $0xa8] sm:$0xff] }
  0x1e   : > { %v2375_v56 = vperm.slane %v344_v53, 0  ;;  %v2377_v57 = vperm.slane %v344_v53, 1 }
  0x1f   : > { %1127 = vmatpush.bf16.msra.mxu2 %v2023_v34 }
  0x20   : > { %1296 = vmatpush.bf16.msra.mxu3 %v2031_v35 }
  0x23   : > { %1128 = vmatpush.bf16.msra.mxu2 %v2022_v38  ;;  %v269_v38 = vld [vmem:[%s2288_s9 + $0xb0] sm:$0xff] }
  0x24   : > { %1297 = vmatpush.bf16.msra.mxu3 %v2030_v39  ;;  %v270_v39 = vld [vmem:[%s2288_s9 + $0xb8] sm:$0xff] }
  0x27   : > { %1129 = vmatpush.bf16.msra.mxu2 %v2021_v41 }
  0x28   : > { %1298 = vmatpush.bf16.msra.mxu3 %v2029_v42  ;;  %v322_v42 = vpack.c.bf16 %v270_v39, %v269_v38 }
  0x2a   : > { %1875 = vmatmul.msk.bf16.gmra.mxu0 %vm355_vm2, %v312_v15  ;;  %1907 = vmatmul.msk.bf16.gmra.mxu1 %vm355_vm2, %v312_v15 }
  0x2b   : > { %1130 = vmatpush.bf16.msra.mxu2 %v2020_v43 }
  0x2c   : > { %1299 = vmatpush.bf16.msra.mxu3 %v2028_v44 }
  0x2f   : > { %1131 = vmatpush.bf16.msra.mxu2 %v2019_v45 }
  0x30   : > { %1300 = vmatpush.bf16.msra.mxu3 %v2027_v46 }
  0x3a   : > { %1876 = vmatmul.msk.bf16.gmra.mxu0 %vm355_vm2, %v313_v18  ;;  %1908 = vmatmul.msk.bf16.gmra.mxu1 %vm355_vm2, %v313_v18 }
  0x4a   : > { %1877 = vmatmul.msk.bf16.gmra.mxu0 %vm355_vm2, %v314_v21  ;;  %1909 = vmatmul.msk.bf16.gmra.mxu1 %vm355_vm2, %v314_v21  ;;  %v267_v21 = vld [vmem:[%s2288_s9 + $0xa0] sm:$0xff] }
  0x4b   : > { %v321_v25 = vpack.c.bf16 %v268_v22, %v267_v21 }
  0x5a   : > { %1878 = vmatmul.msk.bf16.gmra.mxu0 %vm355_vm2, %v315_v24  ;;  %1910 = vmatmul.msk.bf16.gmra.mxu1 %vm355_vm2, %v315_v24 }
  0x6a   : > { %1879 = vmatmul.msk.bf16.gmra.mxu0 %vm355_vm2, %v316_v29  ;;  %1911 = vmatmul.msk.bf16.gmra.mxu1 %vm355_vm2, %v316_v29 }
  0x7a   : > { %1880 = vmatmul.msk.bf16.gmra.mxu0 %vm355_vm2, %v317_v40  ;;  %1912 = vmatmul.msk.bf16.gmra.mxu1 %vm355_vm2, %v317_v40 }
  0x8a   : > { %1881 = vmatmul.msk.bf16.gmra.mxu0 %vm355_vm2, %v318_v49  ;;  %1913 = vmatmul.msk.bf16.gmra.mxu1 %vm355_vm2, %v318_v49 }
  0x97   : > { %v471_v54 = vpop.f32.mrf.mxu0  ;;  %v640_v55 = vpop.f32.mrf.mxu1 }
  0x98   : > { %v472_v58 = vadd.f32 %v471_v54, %v2375_v56  ;;  %v641_v59 = vadd.f32 %v640_v55, %v2377_v57  ;;  %v271_v55 = vld [vmem:[%s2288_s9 + $0xc0] sm:$0xff] }
  0x9a   : > { %1882 = vmatmul.msk.bf16.gmra.mxu0 %vm355_vm2, %v319_v52  ;;  %1914 = vmatmul.msk.bf16.gmra.mxu1 %vm355_vm2, %v319_v52  ;;  %v800_v0 = vmax.f32 %v472_v58, 0.0  ;;  %v801_v1 = vmax.f32 %v641_v59, 0.0  ;;  %v272_v58 = vld [vmem:[%s2288_s9 + $0xc8] sm:$0xff] }
  0x9f   : > { %v473_v60 = vpop.f32.mrf.mxu0  ;;  %v642_v61 = vpop.f32.mrf.mxu1 }
  0xa0   : > { %v474_v62 = vadd.f32 %v473_v60, %v2375_v56  ;;  %v643_v63 = vadd.f32 %v642_v61, %v2377_v57  ;;  %v323_v61 = vpack.c.bf16 %v272_v58, %v271_v55 }
  0xa2   : > { %v802_v2 = vmax.f32 %v474_v62, 0.0  ;;  %v803_v3 = vmax.f32 %v643_v63, 0.0 }
  0xa4   : > { %v928_v6 = vpack.c.bf16 %v802_v2, %v800_v0  ;;  %v929_v7 = vpack.c.bf16 %v803_v3, %v801_v1 }
  0xa6   : > { %1132 = vmatmul.bf16.vlgmr.msra.gmra.mxu2 %v928_v6  ;;  %1301 = vmatmul.bf16.vlgmr.msra.gmra.mxu3 %v929_v7 }
  0xa7   : > { %v476_v9 = vpop.f32.mrf.mxu0  ;;  %v645_v10 = vpop.f32.mrf.mxu1 }
  0xa8   : > { %v477_v11 = vadd.f32 %v476_v9, %v2375_v56  ;;  %v646_v12 = vadd.f32 %v645_v10, %v2377_v57  ;;  %v273_v10 = vld [vmem:[%s2288_s9 + $0xd0] sm:$0xff] }
  0xaa   : > { %1883 = vmatmul.msk.bf16.gmra.mxu0 %vm355_vm2, %v320_v8  ;;  %1915 = vmatmul.msk.bf16.gmra.mxu1 %vm355_vm2, %v320_v8  ;;  %v804_v17 = vmax.f32 %v477_v11, 0.0  ;;  %v805_v18 = vmax.f32 %v646_v12, 0.0  ;;  %v274_v11 = vld [vmem:[%s2288_s9 + $0xd8] sm:$0xff] }
  0xaf   : > { %v478_v13 = vpop.f32.mrf.mxu0  ;;  %v647_v14 = vpop.f32.mrf.mxu1 }
  0xb0   : > { %v479_v15 = vadd.f32 %v478_v13, %v2375_v56  ;;  %v648_v16 = vadd.f32 %v647_v14, %v2377_v57  ;;  %v324_v14 = vpack.c.bf16 %v274_v11, %v273_v10 }
  0xb2   : > { %v806_v19 = vmax.f32 %v479_v15, 0.0  ;;  %v807_v20 = vmax.f32 %v648_v16, 0.0 }
  0xb4   : > { %v930_v23 = vpack.c.bf16 %v806_v19, %v804_v17  ;;  %v931_v24 = vpack.c.bf16 %v807_v20, %v805_v18 }
  0xb6   : > { %1137 = vmatmul.bf16.gmra.mxu2 %v930_v23  ;;  %1306 = vmatmul.bf16.gmra.mxu3 %v931_v24 }
  0xb7   : > { %v481_v26 = vpop.f32.mrf.mxu0  ;;  %v650_v27 = vpop.f32.mrf.mxu1 }
  0xb8   : > { %v482_v28 = vadd.f32 %v481_v26, %v2375_v56  ;;  %v651_v29 = vadd.f32 %v650_v27, %v2377_v57  ;;  %v275_v27 = vld [vmem:[%s2288_s9 + $0xe0] sm:$0xff] }
  0xba   : > { %1884 = vmatmul.msk.bf16.gmra.mxu0 %vm355_vm2, %v321_v25  ;;  %1916 = vmatmul.msk.bf16.gmra.mxu1 %vm355_vm2, %v321_v25  ;;  %v808_v34 = vmax.f32 %v482_v28, 0.0  ;;  %v809_v35 = vmax.f32 %v651_v29, 0.0  ;;  %v276_v28 = vld [vmem:[%s2288_s9 + $0xe8] sm:$0xff] }
  0xbf   : > { %v483_v30 = vpop.f32.mrf.mxu0  ;;  %v652_v31 = vpop.f32.mrf.mxu1 }
  0xc0   : > { %v484_v32 = vadd.f32 %v483_v30, %v2375_v56  ;;  %v653_v33 = vadd.f32 %v652_v31, %v2377_v57  ;;  %v325_v31 = vpack.c.bf16 %v276_v28, %v275_v27 }
  0xc2   : > { %v810_v36 = vmax.f32 %v484_v32, 0.0  ;;  %v811_v37 = vmax.f32 %v653_v33, 0.0 }
  0xc4   : > { %v932_v40 = vpack.c.bf16 %v810_v36, %v808_v34  ;;  %v933_v41 = vpack.c.bf16 %v811_v37, %v809_v35 }
  0xc6   : > { %1142 = vmatmul.bf16.gmra.mxu2 %v932_v40  ;;  %1311 = vmatmul.bf16.gmra.mxu3 %v933_v41 }
  0xc7   : > { %v486_v43 = vpop.f32.mrf.mxu0  ;;  %v655_v44 = vpop.f32.mrf.mxu1 }
  0xc8   : > { %v487_v45 = vadd.f32 %v486_v43, %v2375_v56  ;;  %v656_v46 = vadd.f32 %v655_v44, %v2377_v57  ;;  %v277_v44 = vld [vmem:[%s2288_s9 + $0xf0] sm:$0xff] }
  0xca   : > { %1885 = vmatmul.msk.bf16.gmra.mxu0 %vm355_vm2, %v322_v42  ;;  %1917 = vmatmul.msk.bf16.gmra.mxu1 %vm355_vm2, %v322_v42  ;;  %v812_v51 = vmax.f32 %v487_v45, 0.0  ;;  %v813_v52 = vmax.f32 %v656_v46, 0.0  ;;  %v278_v45 = vld [vmem:[%s2288_s9 + $0xf8] sm:$0xff] }
  0xcf   : > { %v488_v47 = vpop.f32.mrf.mxu0  ;;  %v657_v48 = vpop.f32.mrf.mxu1 }
  0xd0   : > { %v489_v49 = vadd.f32 %v488_v47, %v2375_v56  ;;  %v658_v50 = vadd.f32 %v657_v48, %v2377_v57  ;;  %v326_v48 = vpack.c.bf16 %v278_v45, %v277_v44 }
  0xd2   : > { %v814_v53 = vmax.f32 %v489_v49, 0.0  ;;  %v815_v54 = vmax.f32 %v658_v50, 0.0 }
  0xd4   : > { %v934_v59 = vpack.c.bf16 %v814_v53, %v812_v51  ;;  %v935_v60 = vpack.c.bf16 %v815_v54, %v813_v52 }
  0xd6   : > { %1147 = vmatmul.bf16.gmra.mxu2 %v934_v59  ;;  %1316 = vmatmul.bf16.gmra.mxu3 %v935_v60 }
  0xd7   : > { %v491_v62 = vpop.f32.mrf.mxu0  ;;  %v660_v63 = vpop.f32.mrf.mxu1 }
  0xd8   : > { %v492_v0 = vadd.f32 %v491_v62, %v2375_v56  ;;  %v661_v1 = vadd.f32 %v660_v63, %v2377_v57  ;;  %v279_v63 = vld [vmem:[%s2288_s9 + $0x100] sm:$0xff] }
  0xda   : > { %1886 = vmatmul.msk.bf16.gmra.mxu0 %vm355_vm2, %v323_v61  ;;  %1918 = vmatmul.msk.bf16.gmra.mxu1 %vm355_vm2, %v323_v61  ;;  %v816_v6 = vmax.f32 %v492_v0, 0.0  ;;  %v817_v7 = vmax.f32 %v661_v1, 0.0  ;;  %v280_v0 = vld [vmem:[%s2288_s9 + $0x108] sm:$0xff] }
  0xdf   : > { %v493_v2 = vpop.f32.mrf.mxu0  ;;  %v662_v3 = vpop.f32.mrf.mxu1 }
  0xe0   : > { %v494_v4 = vadd.f32 %v493_v2, %v2375_v56  ;;  %v663_v5 = vadd.f32 %v662_v3, %v2377_v57  ;;  %v327_v3 = vpack.c.bf16 %v280_v0, %v279_v63 }
  0xe2   : > { %v818_v8 = vmax.f32 %v494_v4, 0.0  ;;  %v819_v9 = vmax.f32 %v663_v5, 0.0 }
  0xe4   : > { %v936_v12 = vpack.c.bf16 %v818_v8, %v816_v6  ;;  %v937_v13 = vpack.c.bf16 %v819_v9, %v817_v7 }
  0xe6   : > { %1152 = vmatmul.bf16.gmra.mxu2 %v936_v12  ;;  %1321 = vmatmul.bf16.gmra.mxu3 %v937_v13 }
  0xe7   : > { %v496_v15 = vpop.f32.mrf.mxu0  ;;  %v665_v16 = vpop.f32.mrf.mxu1 }
  0xe8   : > { %v497_v17 = vadd.f32 %v496_v15, %v2375_v56  ;;  %v666_v18 = vadd.f32 %v665_v16, %v2377_v57  ;;  %v281_v16 = vld [vmem:[%s2288_s9 + $0x110] sm:$0xff] }
  0xea   : > { %1887 = vmatmul.msk.bf16.gmra.mxu0 %vm355_vm2, %v324_v14  ;;  %1919 = vmatmul.msk.bf16.gmra.mxu1 %vm355_vm2, %v324_v14  ;;  %v820_v23 = vmax.f32 %v497_v17, 0.0  ;;  %v821_v24 = vmax.f32 %v666_v18, 0.0  ;;  %v282_v17 = vld [vmem:[%s2288_s9 + $0x118] sm:$0xff] }
  0xef   : > { %v498_v19 = vpop.f32.mrf.mxu0  ;;  %v667_v20 = vpop.f32.mrf.mxu1 }
  0xf0   : > { %v499_v21 = vadd.f32 %v498_v19, %v2375_v56  ;;  %v668_v22 = vadd.f32 %v667_v20, %v2377_v57  ;;  %v2455_v20 = vld [vmem:[%s2952_s4] ss:$0 sm:$0xff] }
  0xf2   : > { %v822_v25 = vmax.f32 %v499_v21, 0.0  ;;  %v823_v26 = vmax.f32 %v668_v22, 0.0  ;;  %v328_v21 = vpack.c.bf16 %v282_v17, %v281_v16 }
  0xf4   : > { %v938_v29 = vpack.c.bf16 %v822_v25, %v820_v23  ;;  %v939_v30 = vpack.c.bf16 %v823_v26, %v821_v24 }
  0xf6   : > { %1157 = vmatmul.bf16.gmra.mxu2 %v938_v29  ;;  %1326 = vmatmul.bf16.gmra.mxu3 %v939_v30 }
  0xf7   : > { %v501_v32 = vpop.f32.mrf.mxu0  ;;  %v670_v33 = vpop.f32.mrf.mxu1 }
  0xf8   : > { %v502_v34 = vadd.f32 %v501_v32, %v2375_v56  ;;  %v671_v35 = vadd.f32 %v670_v33, %v2377_v57 }
  0xfa   : > { %1888 = vmatmul.msk.bf16.gmra.mxu0 %vm355_vm2, %v325_v31  ;;  %1920 = vmatmul.msk.bf16.gmra.mxu1 %vm355_vm2, %v325_v31  ;;  %v824_v40 = vmax.f32 %v502_v34, 0.0  ;;  %v825_v41 = vmax.f32 %v671_v35, 0.0 }
  0xff   : > { %v503_v36 = vpop.f32.mrf.mxu0  ;;  %v672_v37 = vpop.f32.mrf.mxu1 }
 0x100   : > { %v504_v38 = vadd.f32 %v503_v36, %v2375_v56  ;;  %v673_v39 = vadd.f32 %v672_v37, %v2377_v57 }
 0x102   : > { %v826_v42 = vmax.f32 %v504_v38, 0.0  ;;  %v827_v43 = vmax.f32 %v673_v39, 0.0 }
 0x104   : > { %v940_v46 = vpack.c.bf16 %v826_v42, %v824_v40  ;;  %v941_v47 = vpack.c.bf16 %v827_v43, %v825_v41  ;;  %v283_v41 = vld [vmem:[%s2288_s9 + $0x120] sm:$0xff]  ;;  %v284_v42 = vld [vmem:[%s2288_s9 + $0x128] sm:$0xff] }
 0x106   : > { %1162 = vmatmul.bf16.gmra.mxu2 %v940_v46  ;;  %1331 = vmatmul.bf16.gmra.mxu3 %v941_v47  ;;  %v329_v46 = vpack.c.bf16 %v284_v42, %v283_v41 }
 0x107   : > { %v506_v49 = vpop.f32.mrf.mxu0  ;;  %v675_v50 = vpop.f32.mrf.mxu1 }
 0x108   : > { %v507_v51 = vadd.f32 %v506_v49, %v2375_v56  ;;  %v676_v52 = vadd.f32 %v675_v50, %v2377_v57 }
 0x10a   : > { %1889 = vmatmul.msk.bf16.gmra.mxu0 %vm355_vm2, %v326_v48  ;;  %1921 = vmatmul.msk.bf16.gmra.mxu1 %vm355_vm2, %v326_v48  ;;  %v828_v59 = vmax.f32 %v507_v51, 0.0  ;;  %v829_v60 = vmax.f32 %v676_v52, 0.0 }
 0x10f   : > { %v508_v53 = vpop.f32.mrf.mxu0  ;;  %v677_v54 = vpop.f32.mrf.mxu1 }
 0x110   : > { %v509_v55 = vadd.f32 %v508_v53, %v2375_v56  ;;  %v678_v58 = vadd.f32 %v677_v54, %v2377_v57 }
 0x112   : > { %v830_v61 = vmax.f32 %v509_v55, 0.0  ;;  %v831_v62 = vmax.f32 %v678_v58, 0.0 }
 0x114   : > { %v942_v1 = vpack.c.bf16 %v830_v61, %v828_v59  ;;  %v943_v2 = vpack.c.bf16 %v831_v62, %v829_v60 }
 0x116   : > { %1167 = vmatmul.bf16.gmra.mxu2 %v942_v1  ;;  %1336 = vmatmul.bf16.gmra.mxu3 %v943_v2 }
 0x117   : > { %v511_v4 = vpop.f32.mrf.mxu0  ;;  %v680_v5 = vpop.f32.mrf.mxu1 }
 0x118   : > { %v512_v6 = vadd.f32 %v511_v4, %v2375_v56  ;;  %v681_v7 = vadd.f32 %v680_v5, %v2377_v57  ;;  %v285_v4 = vld [vmem:[%s2288_s9 + $0x130] sm:$0xff]  ;;  %v286_v5 = vld [vmem:[%s2288_s9 + $0x138] sm:$0xff] }
 0x11a   : > { %1890 = vmatmul.msk.bf16.gmra.mxu0 %vm355_vm2, %v327_v3  ;;  %1922 = vmatmul.msk.bf16.gmra.mxu1 %vm355_vm2, %v327_v3  ;;  %v832_v12 = vmax.f32 %v512_v6, 0.0  ;;  %v833_v13 = vmax.f32 %v681_v7, 0.0 }
 0x11f   : > { %v513_v8 = vpop.f32.mrf.mxu0  ;;  %v682_v9 = vpop.f32.mrf.mxu1 }
 0x120   : > { %v514_v10 = vadd.f32 %v513_v8, %v2375_v56  ;;  %v683_v11 = vadd.f32 %v682_v9, %v2377_v57  ;;  %v330_v9 = vpack.c.bf16 %v286_v5, %v285_v4 }
 0x122   : > { %v834_v14 = vmax.f32 %v514_v10, 0.0  ;;  %v835_v15 = vmax.f32 %v683_v11, 0.0 }
 0x124   : > { %v944_v18 = vpack.c.bf16 %v834_v14, %v832_v12  ;;  %v945_v19 = vpack.c.bf16 %v835_v15, %v833_v13 }
 0x126   : > { %1172 = vmatmul.bf16.gmra.mxu2 %v944_v18  ;;  %1341 = vmatmul.bf16.gmra.mxu3 %v945_v19 }
 0x127   : > { %v516_v22 = vpop.f32.mrf.mxu0  ;;  %v685_v23 = vpop.f32.mrf.mxu1 }
 0x128   : > { %v517_v28 = vadd.f32 %v516_v22, %v2375_v56  ;;  %v686_v29 = vadd.f32 %v685_v23, %v2377_v57 }
 0x129   : > { %v1133_v24 = vpop.f32.mrf.mxu2  ;;  %v1302_v25 = vpop.f32.mrf.mxu3 }
 0x12a   : > { %v1134_v26 = vadd.f32 %v2455_v20, %v1133_v24  ;;  %1891 = vmatmul.msk.bf16.gmra.mxu0 %vm355_vm2, %v328_v21  ;;  %1923 = vmatmul.msk.bf16.gmra.mxu1 %vm355_vm2, %v328_v21  ;;  %v836_v34 = vmax.f32 %v517_v28, 0.0  ;;  %v837_v37 = vmax.f32 %v686_v29, 0.0 }
 0x12c   : > { %v1303_v27 = vadd.f32 %v1302_v25, %v1134_v26 }
 0x12e   : > { %1463 = vst.msk [vmem:[%s2462_s18] sm:$0xff] %vm1462_vm3, %v1303_v27 }
 0x12f   : > { %v518_v30 = vpop.f32.mrf.mxu0  ;;  %v687_v31 = vpop.f32.mrf.mxu1 }
 0x130   : > { %v519_v32 = vadd.f32 %v518_v30, %v2375_v56  ;;  %v688_v33 = vadd.f32 %v687_v31, %v2377_v57  ;;  %v287_v30 = vld [vmem:[%s2288_s9 + $0x140] sm:$0xff]  ;;  %v288_v31 = vld [vmem:[%s2288_s9 + $0x148] sm:$0xff] }
 0x131   : > { %v1135_v35 = vpop.f32.mrf.mxu2  ;;  %v1304_v36 = vpop.f32.mrf.mxu3 }
 0x132   : > { %v838_v38 = vmax.f32 %v519_v32, 0.0  ;;  %v839_v39 = vmax.f32 %v688_v33, 0.0  ;;  %v1136_v40 = vadd.f32 %v2455_v20, %v1135_v35  ;;  %v331_v35 = vpack.c.bf16 %v288_v31, %v287_v30 }
 0x134   : > { %v1305_v43 = vadd.f32 %v1304_v36, %v1136_v40  ;;  %v946_v44 = vpack.c.bf16 %v838_v38, %v836_v34  ;;  %v947_v45 = vpack.c.bf16 %v839_v39, %v837_v37 }
 0x136   : > { %1464 = vst.msk [vmem:[%s2462_s18 + $0x8] sm:$0xff] %vm1462_vm3, %v1305_v43  ;;  %1177 = vmatmul.bf16.gmra.mxu2 %v946_v44  ;;  %1346 = vmatmul.bf16.gmra.mxu3 %v947_v45 }
 0x137   : > { %v521_v47 = vpop.f32.mrf.mxu0  ;;  %v690_v48 = vpop.f32.mrf.mxu1 }
 0x138   : > { %v522_v53 = vadd.f32 %v521_v47, %v2375_v56  ;;  %v691_v54 = vadd.f32 %v690_v48, %v2377_v57 }
 0x139   : > { %v1138_v49 = vpop.f32.mrf.mxu2  ;;  %v1307_v50 = vpop.f32.mrf.mxu3 }
 0x13a   : > { %v1139_v51 = vadd.f32 %v2455_v20, %v1138_v49  ;;  %1892 = vmatmul.msk.bf16.gmra.mxu0 %vm355_vm2, %v329_v46  ;;  %1924 = vmatmul.msk.bf16.gmra.mxu1 %vm355_vm2, %v329_v46  ;;  %v840_v61 = vmax.f32 %v522_v53, 0.0  ;;  %v841_v0 = vmax.f32 %v691_v54, 0.0 }
 0x13c   : > { %v1308_v52 = vadd.f32 %v1307_v50, %v1139_v51 }
 0x13e   : > { %1465 = vst.msk [vmem:[%s2462_s18 + $0x10] sm:$0xff] %vm1462_vm3, %v1308_v52 }
 0x13f   : > { %v523_v55 = vpop.f32.mrf.mxu0  ;;  %v692_v58 = vpop.f32.mrf.mxu1 }
 0x140   : > { %v524_v59 = vadd.f32 %v523_v55, %v2375_v56  ;;  %v693_v60 = vadd.f32 %v692_v58, %v2377_v57  ;;  %v289_v55 = vld [vmem:[%s2288_s9 + $0x150] sm:$0xff]  ;;  %v290_v58 = vld [vmem:[%s2288_s9 + $0x158] sm:$0xff] }
 0x141   : > { %v1140_v62 = vpop.f32.mrf.mxu2  ;;  %v1309_v63 = vpop.f32.mrf.mxu3 }
 0x142   : > { %v842_v1 = vmax.f32 %v524_v59, 0.0  ;;  %v843_v2 = vmax.f32 %v693_v60, 0.0  ;;  %v1141_v3 = vadd.f32 %v2455_v20, %v1140_v62  ;;  %v332_v62 = vpack.c.bf16 %v290_v58, %v289_v55 }
 0x144   : > { %v1310_v6 = vadd.f32 %v1309_v63, %v1141_v3  ;;  %v948_v7 = vpack.c.bf16 %v842_v1, %v840_v61  ;;  %v949_v8 = vpack.c.bf16 %v843_v2, %v841_v0 }
 0x146   : > { %1466 = vst.msk [vmem:[%s2462_s18 + $0x18] sm:$0xff] %vm1462_vm3, %v1310_v6  ;;  %1182 = vmatmul.bf16.gmra.mxu2 %v948_v7  ;;  %1351 = vmatmul.bf16.gmra.mxu3 %v949_v8 }
 0x147   : > { %v526_v10 = vpop.f32.mrf.mxu0  ;;  %v695_v11 = vpop.f32.mrf.mxu1 }
 0x148   : > { %v527_v16 = vadd.f32 %v526_v10, %v2375_v56  ;;  %v696_v17 = vadd.f32 %v695_v11, %v2377_v57 }
 0x149   : > { %v1143_v12 = vpop.f32.mrf.mxu2  ;;  %v1312_v13 = vpop.f32.mrf.mxu3 }
 0x14a   : > { %v1144_v14 = vadd.f32 %v2455_v20, %v1143_v12  ;;  %1893 = vmatmul.msk.bf16.gmra.mxu0 %vm355_vm2, %v330_v9  ;;  %1925 = vmatmul.msk.bf16.gmra.mxu1 %vm355_vm2, %v330_v9  ;;  %v844_v23 = vmax.f32 %v527_v16, 0.0  ;;  %v845_v26 = vmax.f32 %v696_v17, 0.0 }
 0x14c   : > { %v1313_v15 = vadd.f32 %v1312_v13, %v1144_v14 }
 0x14e   : > { %1467 = vst.msk [vmem:[%s2462_s18 + $0x20] sm:$0xff] %vm1462_vm3, %v1313_v15 }
 0x14f   : > { %v528_v18 = vpop.f32.mrf.mxu0  ;;  %v697_v19 = vpop.f32.mrf.mxu1 }
 0x150   : > { %v529_v21 = vadd.f32 %v528_v18, %v2375_v56  ;;  %v698_v22 = vadd.f32 %v697_v19, %v2377_v57  ;;  %v291_v18 = vld [vmem:[%s2288_s9 + $0x160] sm:$0xff]  ;;  %v292_v19 = vld [vmem:[%s2288_s9 + $0x168] sm:$0xff] }
 0x151   : > { %v1145_v24 = vpop.f32.mrf.mxu2  ;;  %v1314_v25 = vpop.f32.mrf.mxu3 }
 0x152   : > { %v846_v27 = vmax.f32 %v529_v21, 0.0  ;;  %v847_v28 = vmax.f32 %v698_v22, 0.0  ;;  %v1146_v29 = vadd.f32 %v2455_v20, %v1145_v24  ;;  %v333_v24 = vpack.c.bf16 %v292_v19, %v291_v18 }
 0x154   : > { %v1315_v32 = vadd.f32 %v1314_v25, %v1146_v29  ;;  %v950_v33 = vpack.c.bf16 %v846_v27, %v844_v23  ;;  %v951_v34 = vpack.c.bf16 %v847_v28, %v845_v26 }
 0x156   : > { %1468 = vst.msk [vmem:[%s2462_s18 + $0x28] sm:$0xff] %vm1462_vm3, %v1315_v32  ;;  %1187 = vmatmul.bf16.gmra.mxu2 %v950_v33  ;;  %1356 = vmatmul.bf16.gmra.mxu3 %v951_v34 }
 0x157   : > { %v531_v36 = vpop.f32.mrf.mxu0  ;;  %v700_v37 = vpop.f32.mrf.mxu1 }
 0x158   : > { %v532_v42 = vadd.f32 %v531_v36, %v2375_v56  ;;  %v701_v43 = vadd.f32 %v700_v37, %v2377_v57 }
 0x159   : > { %v1148_v38 = vpop.f32.mrf.mxu2  ;;  %v1317_v39 = vpop.f32.mrf.mxu3 }
 0x15a   : > { %v1149_v40 = vadd.f32 %v2455_v20, %v1148_v38  ;;  %1894 = vmatmul.msk.bf16.gmra.mxu0 %vm355_vm2, %v331_v35  ;;  %1926 = vmatmul.msk.bf16.gmra.mxu1 %vm355_vm2, %v331_v35  ;;  %v848_v48 = vmax.f32 %v532_v42, 0.0  ;;  %v849_v51 = vmax.f32 %v701_v43, 0.0 }
 0x15c   : > { %v1318_v41 = vadd.f32 %v1317_v39, %v1149_v40 }
 0x15e   : > { %1469 = vst.msk [vmem:[%s2462_s18 + $0x30] sm:$0xff] %vm1462_vm3, %v1318_v41 }
 0x15f   : > { %v533_v44 = vpop.f32.mrf.mxu0  ;;  %v702_v45 = vpop.f32.mrf.mxu1 }
 0x160   : > { %v534_v46 = vadd.f32 %v533_v44, %v2375_v56  ;;  %v703_v47 = vadd.f32 %v702_v45, %v2377_v57  ;;  %v293_v44 = vld [vmem:[%s2288_s9 + $0x170] sm:$0xff]  ;;  %v294_v45 = vld [vmem:[%s2288_s9 + $0x178] sm:$0xff] }
 0x161   : > { %v1150_v49 = vpop.f32.mrf.mxu2  ;;  %v1319_v50 = vpop.f32.mrf.mxu3 }
 0x162   : > { %v850_v52 = vmax.f32 %v534_v46, 0.0  ;;  %v851_v53 = vmax.f32 %v703_v47, 0.0  ;;  %v1151_v54 = vadd.f32 %v2455_v20, %v1150_v49  ;;  %v334_v49 = vpack.c.bf16 %v294_v45, %v293_v44 }
 0x164   : > { %v1320_v59 = vadd.f32 %v1319_v50, %v1151_v54  ;;  %v952_v60 = vpack.c.bf16 %v850_v52, %v848_v48  ;;  %v953_v61 = vpack.c.bf16 %v851_v53, %v849_v51 }
 0x166   : > { %1470 = vst.msk [vmem:[%s2462_s18 + $0x38] sm:$0xff] %vm1462_vm3, %v1320_v59  ;;  %1192 = vmatmul.bf16.gmra.mxu2 %v952_v60  ;;  %1361 = vmatmul.bf16.gmra.mxu3 %v953_v61 }
 0x167   : > { %v536_v63 = vpop.f32.mrf.mxu0  ;;  %v705_v0 = vpop.f32.mrf.mxu1 }
 0x168   : > { %v537_v5 = vadd.f32 %v536_v63, %v2375_v56  ;;  %v706_v6 = vadd.f32 %v705_v0, %v2377_v57 }
 0x169   : > { %v1153_v1 = vpop.f32.mrf.mxu2  ;;  %v1322_v2 = vpop.f32.mrf.mxu3 }
 0x16a   : > { %v1154_v3 = vadd.f32 %v2455_v20, %v1153_v1  ;;  %1895 = vmatmul.msk.bf16.gmra.mxu0 %vm355_vm2, %v332_v62  ;;  %1927 = vmatmul.msk.bf16.gmra.mxu1 %vm355_vm2, %v332_v62  ;;  %v852_v11 = vmax.f32 %v537_v5, 0.0  ;;  %v853_v14 = vmax.f32 %v706_v6, 0.0 }
 0x16c   : > { %v1323_v4 = vadd.f32 %v1322_v2, %v1154_v3 }
 0x16e   : > { %1471 = vst.msk [vmem:[%s2462_s18 + $0x40] sm:$0xff] %vm1462_vm3, %v1323_v4 }
 0x16f   : > { %v538_v7 = vpop.f32.mrf.mxu0  ;;  %v707_v8 = vpop.f32.mrf.mxu1 }
 0x170   : > { %v539_v9 = vadd.f32 %v538_v7, %v2375_v56  ;;  %v708_v10 = vadd.f32 %v707_v8, %v2377_v57  ;;  %v295_v7 = vld [vmem:[%s2288_s9 + $0x180] sm:$0xff]  ;;  %v296_v8 = vld [vmem:[%s2288_s9 + $0x188] sm:$0xff] }
 0x171   : > { %v1155_v12 = vpop.f32.mrf.mxu2  ;;  %v1324_v13 = vpop.f32.mrf.mxu3 }
 0x172   : > { %v854_v15 = vmax.f32 %v539_v9, 0.0  ;;  %v855_v16 = vmax.f32 %v708_v10, 0.0  ;;  %v1156_v17 = vadd.f32 %v2455_v20, %v1155_v12  ;;  %v335_v12 = vpack.c.bf16 %v296_v8, %v295_v7 }
 0x174   : > { %v1325_v21 = vadd.f32 %v1324_v13, %v1156_v17  ;;  %v954_v22 = vpack.c.bf16 %v854_v15, %v852_v11  ;;  %v955_v23 = vpack.c.bf16 %v855_v16, %v853_v14 }
 0x176   : > { %1472 = vst.msk [vmem:[%s2462_s18 + $0x48] sm:$0xff] %vm1462_vm3, %v1325_v21  ;;  %1197 = vmatmul.bf16.gmra.mxu2 %v954_v22  ;;  %1366 = vmatmul.bf16.gmra.mxu3 %v955_v23 }
 0x177   : > { %v541_v25 = vpop.f32.mrf.mxu0  ;;  %v710_v26 = vpop.f32.mrf.mxu1 }
 0x178   : > { %v542_v31 = vadd.f32 %v541_v25, %v2375_v56  ;;  %v711_v32 = vadd.f32 %v710_v26, %v2377_v57 }
 0x179   : > { %v1158_v27 = vpop.f32.mrf.mxu2  ;;  %v1327_v28 = vpop.f32.mrf.mxu3 }
 0x17a   : > { %v1159_v29 = vadd.f32 %v2455_v20, %v1158_v27  ;;  %1896 = vmatmul.msk.bf16.gmra.mxu0 %vm355_vm2, %v333_v24  ;;  %1928 = vmatmul.msk.bf16.gmra.mxu1 %vm355_vm2, %v333_v24  ;;  %v856_v37 = vmax.f32 %v542_v31, 0.0  ;;  %v857_v40 = vmax.f32 %v711_v32, 0.0 }
 0x17c   : > { %v1328_v30 = vadd.f32 %v1327_v28, %v1159_v29 }
 0x17e   : > { %1473 = vst.msk [vmem:[%s2462_s18 + $0x50] sm:$0xff] %vm1462_vm3, %v1328_v30 }
 0x17f   : > { %v543_v33 = vpop.f32.mrf.mxu0  ;;  %v712_v34 = vpop.f32.mrf.mxu1 }
 0x180   : > { %v544_v35 = vadd.f32 %v543_v33, %v2375_v56  ;;  %v713_v36 = vadd.f32 %v712_v34, %v2377_v57  ;;  %v297_v33 = vld [vmem:[%s2288_s9 + $0x190] sm:$0xff]  ;;  %v298_v34 = vld [vmem:[%s2288_s9 + $0x198] sm:$0xff] }
 0x181   : > { %v1160_v38 = vpop.f32.mrf.mxu2  ;;  %v1329_v39 = vpop.f32.mrf.mxu3 }
 0x182   : > { %v858_v41 = vmax.f32 %v544_v35, 0.0  ;;  %v859_v42 = vmax.f32 %v713_v36, 0.0  ;;  %v1161_v43 = vadd.f32 %v2455_v20, %v1160_v38  ;;  %v336_v38 = vpack.c.bf16 %v298_v34, %v297_v33 }
 0x184   : > { %v1330_v46 = vadd.f32 %v1329_v39, %v1161_v43  ;;  %v956_v47 = vpack.c.bf16 %v858_v41, %v856_v37  ;;  %v957_v48 = vpack.c.bf16 %v859_v42, %v857_v40 }
 0x186   : > { %1474 = vst.msk [vmem:[%s2462_s18 + $0x58] sm:$0xff] %vm1462_vm3, %v1330_v46  ;;  %1202 = vmatmul.bf16.gmra.mxu2 %v956_v47  ;;  %1371 = vmatmul.bf16.gmra.mxu3 %v957_v48 }
 0x187   : > { %v546_v50 = vpop.f32.mrf.mxu0  ;;  %v715_v51 = vpop.f32.mrf.mxu1 }
 0x188   : > { %v547_v58 = vadd.f32 %v546_v50, %v2375_v56  ;;  %v716_v59 = vadd.f32 %v715_v51, %v2377_v57 }
 0x189   : > { %v1163_v52 = vpop.f32.mrf.mxu2  ;;  %v1332_v53 = vpop.f32.mrf.mxu3 }
 0x18a   : > { %v1164_v54 = vadd.f32 %v2455_v20, %v1163_v52  ;;  %1897 = vmatmul.msk.bf16.gmra.mxu0 %vm355_vm2, %v334_v49  ;;  %1929 = vmatmul.msk.bf16.gmra.mxu1 %vm355_vm2, %v334_v49  ;;  %v860_v0 = vmax.f32 %v547_v58, 0.0  ;;  %v861_v3 = vmax.f32 %v716_v59, 0.0 }
 0x18c   : > { %v1333_v55 = vadd.f32 %v1332_v53, %v1164_v54 }
 0x18e   : > { %1475 = vst.msk [vmem:[%s2462_s18 + $0x60] sm:$0xff] %vm1462_vm3, %v1333_v55 }
 0x18f   : > { %v548_v60 = vpop.f32.mrf.mxu0  ;;  %v717_v61 = vpop.f32.mrf.mxu1 }
 0x190   : > { %v549_v62 = vadd.f32 %v548_v60, %v2375_v56  ;;  %v718_v63 = vadd.f32 %v717_v61, %v2377_v57  ;;  %v299_v60 = vld [vmem:[%s2288_s9 + $0x1a0] sm:$0xff]  ;;  %v300_v61 = vld [vmem:[%s2288_s9 + $0x1a8] sm:$0xff] }
 0x191   : > { %v1165_v1 = vpop.f32.mrf.mxu2  ;;  %v1334_v2 = vpop.f32.mrf.mxu3 }
 0x192   : > { %v862_v4 = vmax.f32 %v549_v62, 0.0  ;;  %v863_v5 = vmax.f32 %v718_v63, 0.0  ;;  %v1166_v6 = vadd.f32 %v2455_v20, %v1165_v1  ;;  %v337_v1 = vpack.c.bf16 %v300_v61, %v299_v60 }
 0x194   : > { %v1335_v9 = vadd.f32 %v1334_v2, %v1166_v6  ;;  %v958_v10 = vpack.c.bf16 %v862_v4, %v860_v0  ;;  %v959_v11 = vpack.c.bf16 %v863_v5, %v861_v3 }
 0x196   : > { %1476 = vst.msk [vmem:[%s2462_s18 + $0x68] sm:$0xff] %vm1462_vm3, %v1335_v9  ;;  %1207 = vmatmul.bf16.gmra.mxu2 %v958_v10  ;;  %1376 = vmatmul.bf16.gmra.mxu3 %v959_v11 }
 0x197   : > { %v551_v13 = vpop.f32.mrf.mxu0  ;;  %v720_v14 = vpop.f32.mrf.mxu1 }
 0x198   : > { %v552_v19 = vadd.f32 %v551_v13, %v2375_v56  ;;  %v721_v21 = vadd.f32 %v720_v14, %v2377_v57 }
 0x199   : > { %v1168_v15 = vpop.f32.mrf.mxu2  ;;  %v1337_v16 = vpop.f32.mrf.mxu3 }
 0x19a   : > { %v1169_v17 = vadd.f32 %v2455_v20, %v1168_v15  ;;  %1898 = vmatmul.msk.bf16.gmra.mxu0 %vm355_vm2, %v335_v12  ;;  %1930 = vmatmul.msk.bf16.gmra.mxu1 %vm355_vm2, %v335_v12  ;;  %v864_v26 = vmax.f32 %v552_v19, 0.0  ;;  %v865_v29 = vmax.f32 %v721_v21, 0.0 }
 0x19c   : > { %v1338_v18 = vadd.f32 %v1337_v16, %v1169_v17 }
 0x19e   : > { %1477 = vst.msk [vmem:[%s2462_s18 + $0x70] sm:$0xff] %vm1462_vm3, %v1338_v18 }
 0x19f   : > { %v553_v22 = vpop.f32.mrf.mxu0  ;;  %v722_v23 = vpop.f32.mrf.mxu1 }
 0x1a0   : > { %v554_v24 = vadd.f32 %v553_v22, %v2375_v56  ;;  %v723_v25 = vadd.f32 %v722_v23, %v2377_v57  ;;  %v301_v22 = vld [vmem:[%s2288_s9 + $0x1b0] sm:$0xff]  ;;  %v302_v23 = vld [vmem:[%s2288_s9 + $0x1b8] sm:$0xff] }
 0x1a1   : > { %v1170_v27 = vpop.f32.mrf.mxu2  ;;  %v1339_v28 = vpop.f32.mrf.mxu3 }
 0x1a2   : > { %v866_v30 = vmax.f32 %v554_v24, 0.0  ;;  %v867_v31 = vmax.f32 %v723_v25, 0.0  ;;  %v1171_v32 = vadd.f32 %v2455_v20, %v1170_v27  ;;  %v338_v27 = vpack.c.bf16 %v302_v23, %v301_v22 }
 0x1a4   : > { %v1340_v35 = vadd.f32 %v1339_v28, %v1171_v32  ;;  %v960_v36 = vpack.c.bf16 %v866_v30, %v864_v26  ;;  %v961_v37 = vpack.c.bf16 %v867_v31, %v865_v29 }
 0x1a6   : > { %1478 = vst.msk [vmem:[%s2462_s18 + $0x78] sm:$0xff] %vm1462_vm3, %v1340_v35  ;;  %1212 = vmatmul.bf16.gmra.mxu2 %v960_v36  ;;  %1381 = vmatmul.bf16.gmra.mxu3 %v961_v37 }
 0x1a7   : > { %v556_v39 = vpop.f32.mrf.mxu0  ;;  %v725_v40 = vpop.f32.mrf.mxu1 }
 0x1a8   : > { %v557_v45 = vadd.f32 %v556_v39, %v2375_v56  ;;  %v726_v46 = vadd.f32 %v725_v40, %v2377_v57 }
 0x1a9   : > { %v1173_v41 = vpop.f32.mrf.mxu2  ;;  %v1342_v42 = vpop.f32.mrf.mxu3 }
 0x1aa   : > { %v1174_v43 = vadd.f32 %v2455_v20, %v1173_v41  ;;  %1899 = vmatmul.msk.bf16.gmra.mxu0 %vm355_vm2, %v336_v38  ;;  %1931 = vmatmul.msk.bf16.gmra.mxu1 %vm355_vm2, %v336_v38  ;;  %v868_v51 = vmax.f32 %v557_v45, 0.0  ;;  %v869_v54 = vmax.f32 %v726_v46, 0.0 }
 0x1ac   : > { %v1343_v44 = vadd.f32 %v1342_v42, %v1174_v43 }
 0x1ae   : > { %1479 = vst.msk [vmem:[%s2462_s18 + $0x80] sm:$0xff] %vm1462_vm3, %v1343_v44 }
 0x1af   : > { %v558_v47 = vpop.f32.mrf.mxu0  ;;  %v727_v48 = vpop.f32.mrf.mxu1 }
 0x1b0   : > { %v559_v49 = vadd.f32 %v558_v47, %v2375_v56  ;;  %v728_v50 = vadd.f32 %v727_v48, %v2377_v57  ;;  %v303_v47 = vld [vmem:[%s2288_s9 + $0x1c0] sm:$0xff]  ;;  %v304_v48 = vld [vmem:[%s2288_s9 + $0x1c8] sm:$0xff] }
 0x1b1   : > { %v1175_v52 = vpop.f32.mrf.mxu2  ;;  %v1344_v53 = vpop.f32.mrf.mxu3 }
 0x1b2   : > { %v870_v55 = vmax.f32 %v559_v49, 0.0  ;;  %v871_v58 = vmax.f32 %v728_v50, 0.0  ;;  %v1176_v59 = vadd.f32 %v2455_v20, %v1175_v52  ;;  %v339_v52 = vpack.c.bf16 %v304_v48, %v303_v47 }
 0x1b4   : > { %v1345_v62 = vadd.f32 %v1344_v53, %v1176_v59  ;;  %v962_v63 = vpack.c.bf16 %v870_v55, %v868_v51  ;;  %v963_v0 = vpack.c.bf16 %v871_v58, %v869_v54 }
 0x1b6   : > { %1480 = vst.msk [vmem:[%s2462_s18 + $0x88] sm:$0xff] %vm1462_vm3, %v1345_v62  ;;  %1217 = vmatmul.bf16.gmra.mxu2 %v962_v63  ;;  %1386 = vmatmul.bf16.gmra.mxu3 %v963_v0 }
 0x1b7   : > { %v561_v2 = vpop.f32.mrf.mxu0  ;;  %v730_v3 = vpop.f32.mrf.mxu1 }
 0x1b8   : > { %v562_v8 = vadd.f32 %v561_v2, %v2375_v56  ;;  %v731_v9 = vadd.f32 %v730_v3, %v2377_v57 }
 0x1b9   : > { %v1178_v4 = vpop.f32.mrf.mxu2  ;;  %v1347_v5 = vpop.f32.mrf.mxu3 }
 0x1ba   : > { %v1179_v6 = vadd.f32 %v2455_v20, %v1178_v4  ;;  %1900 = vmatmul.msk.bf16.gmra.mxu0 %vm355_vm2, %v337_v1  ;;  %1932 = vmatmul.msk.bf16.gmra.mxu1 %vm355_vm2, %v337_v1  ;;  %v872_v14 = vmax.f32 %v562_v8, 0.0  ;;  %v873_v17 = vmax.f32 %v731_v9, 0.0 }
 0x1bc   : > { %v1348_v7 = vadd.f32 %v1347_v5, %v1179_v6 }
 0x1be   : > { %1481 = vst.msk [vmem:[%s2462_s18 + $0x90] sm:$0xff] %vm1462_vm3, %v1348_v7 }
 0x1bf   : > { %v563_v10 = vpop.f32.mrf.mxu0  ;;  %v732_v11 = vpop.f32.mrf.mxu1 }
 0x1c0   : > { %v564_v12 = vadd.f32 %v563_v10, %v2375_v56  ;;  %v733_v13 = vadd.f32 %v732_v11, %v2377_v57  ;;  %v305_v10 = vld [vmem:[%s2288_s9 + $0x1d0] sm:$0xff]  ;;  %v306_v11 = vld [vmem:[%s2288_s9 + $0x1d8] sm:$0xff] }
 0x1c1   : > { %v1180_v15 = vpop.f32.mrf.mxu2  ;;  %v1349_v16 = vpop.f32.mrf.mxu3 }
 0x1c2   : > { %v874_v18 = vmax.f32 %v564_v12, 0.0  ;;  %v875_v19 = vmax.f32 %v733_v13, 0.0  ;;  %v1181_v21 = vadd.f32 %v2455_v20, %v1180_v15  ;;  %v340_v15 = vpack.c.bf16 %v306_v11, %v305_v10 }
 0x1c4   : > { %v1350_v24 = vadd.f32 %v1349_v16, %v1181_v21  ;;  %v964_v25 = vpack.c.bf16 %v874_v18, %v872_v14  ;;  %v965_v26 = vpack.c.bf16 %v875_v19, %v873_v17 }
 0x1c6   : > { %1482 = vst.msk [vmem:[%s2462_s18 + $0x98] sm:$0xff] %vm1462_vm3, %v1350_v24  ;;  %1222 = vmatmul.bf16.gmra.mxu2 %v964_v25  ;;  %1391 = vmatmul.bf16.gmra.mxu3 %v965_v26 }
 0x1c7   : > { %v566_v28 = vpop.f32.mrf.mxu0  ;;  %v735_v29 = vpop.f32.mrf.mxu1 }
 0x1c8   : > { %v567_v34 = vadd.f32 %v566_v28, %v2375_v56  ;;  %v736_v35 = vadd.f32 %v735_v29, %v2377_v57 }
 0x1c9   : > { %v1183_v30 = vpop.f32.mrf.mxu2  ;;  %v1352_v31 = vpop.f32.mrf.mxu3 }
 0x1ca   : > { %v1184_v32 = vadd.f32 %v2455_v20, %v1183_v30  ;;  %1901 = vmatmul.msk.bf16.gmra.mxu0 %vm355_vm2, %v338_v27  ;;  %1933 = vmatmul.msk.bf16.gmra.mxu1 %vm355_vm2, %v338_v27  ;;  %v876_v40 = vmax.f32 %v567_v34, 0.0  ;;  %v877_v43 = vmax.f32 %v736_v35, 0.0 }
 0x1cc   : > { %v1353_v33 = vadd.f32 %v1352_v31, %v1184_v32 }
 0x1ce   : > { %1483 = vst.msk [vmem:[%s2462_s18 + $0xa0] sm:$0xff] %vm1462_vm3, %v1353_v33 }
 0x1cf   : > { %v568_v36 = vpop.f32.mrf.mxu0  ;;  %v737_v37 = vpop.f32.mrf.mxu1 }
 0x1d0   : > { %v569_v38 = vadd.f32 %v568_v36, %v2375_v56  ;;  %v738_v39 = vadd.f32 %v737_v37, %v2377_v57  ;;  %v307_v36 = vld [vmem:[%s2288_s9 + $0x1e0] sm:$0xff]  ;;  %v308_v37 = vld [vmem:[%s2288_s9 + $0x1e8] sm:$0xff] }
 0x1d1   : > { %v1185_v41 = vpop.f32.mrf.mxu2  ;;  %v1354_v42 = vpop.f32.mrf.mxu3 }
 0x1d2   : > { %v878_v44 = vmax.f32 %v569_v38, 0.0  ;;  %v879_v45 = vmax.f32 %v738_v39, 0.0  ;;  %v1186_v46 = vadd.f32 %v2455_v20, %v1185_v41  ;;  %v341_v41 = vpack.c.bf16 %v308_v37, %v307_v36 }
 0x1d4   : > { %v1355_v49 = vadd.f32 %v1354_v42, %v1186_v46  ;;  %v966_v50 = vpack.c.bf16 %v878_v44, %v876_v40  ;;  %v967_v51 = vpack.c.bf16 %v879_v45, %v877_v43 }
 0x1d6   : > { %1484 = vst.msk [vmem:[%s2462_s18 + $0xa8] sm:$0xff] %vm1462_vm3, %v1355_v49  ;;  %1227 = vmatmul.bf16.gmra.mxu2 %v966_v50  ;;  %1396 = vmatmul.bf16.gmra.mxu3 %v967_v51 }
 0x1d7   : > { %v571_v53 = vpop.f32.mrf.mxu0  ;;  %v740_v54 = vpop.f32.mrf.mxu1 }
 0x1d8   : > { %v572_v61 = vadd.f32 %v571_v53, %v2375_v56  ;;  %v741_v62 = vadd.f32 %v740_v54, %v2377_v57 }
 0x1d9   : > { %v1188_v55 = vpop.f32.mrf.mxu2  ;;  %v1357_v58 = vpop.f32.mrf.mxu3 }
 0x1da   : > { %v1189_v59 = vadd.f32 %v2455_v20, %v1188_v55  ;;  %1902 = vmatmul.msk.bf16.gmra.mxu0 %vm355_vm2, %v339_v52  ;;  %1934 = vmatmul.msk.bf16.gmra.mxu1 %vm355_vm2, %v339_v52  ;;  %v880_v3 = vmax.f32 %v572_v61, 0.0  ;;  %v881_v6 = vmax.f32 %v741_v62, 0.0 }
 0x1dc   : > { %v1358_v60 = vadd.f32 %v1357_v58, %v1189_v59 }
 0x1de   : > { %1485 = vst.msk [vmem:[%s2462_s18 + $0xb0] sm:$0xff] %vm1462_vm3, %v1358_v60 }
 0x1df   : > { %v573_v63 = vpop.f32.mrf.mxu0  ;;  %v742_v0 = vpop.f32.mrf.mxu1 }
 0x1e0   : > { %v574_v1 = vadd.f32 %v573_v63, %v2375_v56  ;;  %v743_v2 = vadd.f32 %v742_v0, %v2377_v57  ;;  %v309_v63 = vld [vmem:[%s2288_s9 + $0x1f0] sm:$0xff]  ;;  %v310_v0 = vld [vmem:[%s2288_s9 + $0x1f8] sm:$0xff] }
 0x1e1   : > { %v1190_v4 = vpop.f32.mrf.mxu2  ;;  %v1359_v5 = vpop.f32.mrf.mxu3 }
 0x1e2   : > { %v882_v7 = vmax.f32 %v574_v1, 0.0  ;;  %v883_v8 = vmax.f32 %v743_v2, 0.0  ;;  %v1191_v9 = vadd.f32 %v2455_v20, %v1190_v4  ;;  %v342_v4 = vpack.c.bf16 %v310_v0, %v309_v63 }
 0x1e4   : > { %v968_v12 = vpack.c.bf16 %v882_v7, %v880_v3  ;;  %v969_v13 = vpack.c.bf16 %v883_v8, %v881_v6  ;;  %v1360_v14 = vadd.f32 %v1359_v5, %v1191_v9 }
 0x1e6   : > { %1486 = vst.msk [vmem:[%s2462_s18 + $0xb8] sm:$0xff] %vm1462_vm3, %v1360_v14  ;;  %1232 = vmatmul.bf16.gmra.mxu2 %v968_v12  ;;  %1401 = vmatmul.bf16.gmra.mxu3 %v969_v13 }
 0x1e7   : > { %v576_v16 = vpop.f32.mrf.mxu0  ;;  %v745_v17 = vpop.f32.mrf.mxu1 }
 0x1e8   : > { %v577_v23 = vadd.f32 %v576_v16, %v2375_v56  ;;  %v746_v24 = vadd.f32 %v745_v17, %v2377_v57 }
 0x1e9   : > { %v1193_v18 = vpop.f32.mrf.mxu2  ;;  %v1362_v19 = vpop.f32.mrf.mxu3 }
 0x1ea   : > { %v1194_v21 = vadd.f32 %v2455_v20, %v1193_v18  ;;  %1903 = vmatmul.msk.bf16.gmra.mxu0 %vm355_vm2, %v340_v15  ;;  %1935 = vmatmul.msk.bf16.gmra.mxu1 %vm355_vm2, %v340_v15  ;;  %v884_v29 = vmax.f32 %v577_v23, 0.0  ;;  %v885_v32 = vmax.f32 %v746_v24, 0.0 }
 0x1ec   : > { %v1363_v22 = vadd.f32 %v1362_v19, %v1194_v21 }
 0x1ee   : > { %1487 = vst.msk [vmem:[%s2462_s18 + $0xc0] sm:$0xff] %vm1462_vm3, %v1363_v22 }
 0x1ef   : > { %v578_v25 = vpop.f32.mrf.mxu0  ;;  %v747_v26 = vpop.f32.mrf.mxu1 }
 0x1f0   : > { %v579_v27 = vadd.f32 %v578_v25, %v2375_v56  ;;  %v748_v28 = vadd.f32 %v747_v26, %v2377_v57 }
 0x1f1   : > { %v1195_v30 = vpop.f32.mrf.mxu2  ;;  %v1364_v31 = vpop.f32.mrf.mxu3 }
 0x1f2   : > { %v886_v33 = vmax.f32 %v579_v27, 0.0  ;;  %v887_v34 = vmax.f32 %v748_v28, 0.0  ;;  %v1196_v35 = vadd.f32 %v2455_v20, %v1195_v30 }
 0x1f4   : > { %v970_v38 = vpack.c.bf16 %v886_v33, %v884_v29  ;;  %v971_v39 = vpack.c.bf16 %v887_v34, %v885_v32  ;;  %v1365_v40 = vadd.f32 %v1364_v31, %v1196_v35 }
 0x1f6   : > { %1488 = vst.msk [vmem:[%s2462_s18 + $0xc8] sm:$0xff] %vm1462_vm3, %v1365_v40  ;;  %1237 = vmatmul.bf16.gmra.mxu2 %v970_v38  ;;  %1406 = vmatmul.bf16.gmra.mxu3 %v971_v39 }
 0x1f7   : > { %v581_v42 = vpop.f32.mrf.mxu0  ;;  %v750_v43 = vpop.f32.mrf.mxu1 }
 0x1f8   : > { %v582_v48 = vadd.f32 %v581_v42, %v2375_v56  ;;  %v751_v49 = vadd.f32 %v750_v43, %v2377_v57 }
 0x1f9   : > { %v1198_v44 = vpop.f32.mrf.mxu2  ;;  %v1367_v45 = vpop.f32.mrf.mxu3 }
 0x1fa   : > { %v1199_v46 = vadd.f32 %v2455_v20, %v1198_v44  ;;  %1904 = vmatmul.msk.bf16.gmra.mxu0 %vm355_vm2, %v341_v41  ;;  %1936 = vmatmul.msk.bf16.gmra.mxu1 %vm355_vm2, %v341_v41  ;;  %v888_v54 = vmax.f32 %v582_v48, 0.0  ;;  %v889_v59 = vmax.f32 %v751_v49, 0.0 }
 0x1fc   : > { %v1368_v47 = vadd.f32 %v1367_v45, %v1199_v46 }
 0x1fe   : > { %1489 = vst.msk [vmem:[%s2462_s18 + $0xd0] sm:$0xff] %vm1462_vm3, %v1368_v47 }
 0x1ff   : > { %v583_v50 = vpop.f32.mrf.mxu0  ;;  %v752_v51 = vpop.f32.mrf.mxu1 }
 0x200   : > { %v584_v52 = vadd.f32 %v583_v50, %v2375_v56  ;;  %v753_v53 = vadd.f32 %v752_v51, %v2377_v57 }
 0x201   : > { %v1200_v55 = vpop.f32.mrf.mxu2  ;;  %v1369_v58 = vpop.f32.mrf.mxu3 }
 0x202   : > { %v890_v60 = vmax.f32 %v584_v52, 0.0  ;;  %v891_v61 = vmax.f32 %v753_v53, 0.0  ;;  %v1201_v62 = vadd.f32 %v2455_v20, %v1200_v55 }
 0x204   : > { %v972_v1 = vpack.c.bf16 %v890_v60, %v888_v54  ;;  %v973_v2 = vpack.c.bf16 %v891_v61, %v889_v59  ;;  %v1370_v3 = vadd.f32 %v1369_v58, %v1201_v62 }
 0x206   : > { %1490 = vst.msk [vmem:[%s2462_s18 + $0xd8] sm:$0xff] %vm1462_vm3, %v1370_v3  ;;  %1242 = vmatmul.bf16.gmra.mxu2 %v972_v1  ;;  %1411 = vmatmul.bf16.gmra.mxu3 %v973_v2 }
 0x207   : > { %v586_v5 = vpop.f32.mrf.mxu0  ;;  %v755_v6 = vpop.f32.mrf.mxu1 }
 0x208   : > { %v587_v11 = vadd.f32 %v586_v5, %v2375_v56  ;;  %v756_v12 = vadd.f32 %v755_v6, %v2377_v57  ;;  %v2687_v5 = vld [vmem:[%s2952_s4] ss:$0 sm:$0xff] }
 0x209   : > { %v1203_v7 = vpop.f32.mrf.mxu2  ;;  %v1372_v8 = vpop.f32.mrf.mxu3 }
 0x20a   : > { %v1204_v9 = vadd.f32 %v2455_v20, %v1203_v7  ;;  %1905 = vmatmul.msk.bf16.gmra.mxu0 %vm355_vm2, %v342_v4  ;;  %1937 = vmatmul.msk.bf16.gmra.mxu1 %vm355_vm2, %v342_v4  ;;  %v892_v17 = vmax.f32 %v587_v11, 0.0  ;;  %v893_v21 = vmax.f32 %v756_v12, 0.0 }
 0x20c   : > { %v1373_v10 = vadd.f32 %v1372_v8, %v1204_v9 }
 0x20e   : > { %1491 = vst.msk [vmem:[%s2462_s18 + $0xe0] sm:$0xff] %vm1462_vm3, %v1373_v10 }
 0x20f   : > { %v588_v13 = vpop.f32.mrf.mxu0  ;;  %v757_v14 = vpop.f32.mrf.mxu1 }
 0x210   : > { %v589_v15 = vadd.f32 %v588_v13, %v2375_v56  ;;  %v758_v16 = vadd.f32 %v757_v14, %v2377_v57 }
 0x211   : > { %v1205_v18 = vpop.f32.mrf.mxu2  ;;  %v1374_v19 = vpop.f32.mrf.mxu3 }
 0x212   : > { %v894_v22 = vmax.f32 %v589_v15, 0.0  ;;  %v895_v23 = vmax.f32 %v758_v16, 0.0  ;;  %v1206_v24 = vadd.f32 %v2455_v20, %v1205_v18 }
 0x214   : > { %v974_v25 = vpack.c.bf16 %v894_v22, %v892_v17  ;;  %v975_v26 = vpack.c.bf16 %v895_v23, %v893_v21  ;;  %v1375_v27 = vadd.f32 %v1374_v19, %v1206_v24 }
 0x216   : > { %1492 = vst.msk [vmem:[%s2462_s18 + $0xe8] sm:$0xff] %vm1462_vm3, %v1375_v27  ;;  %1247 = vmatmul.bf16.gmra.mxu2 %v974_v25  ;;  %1416 = vmatmul.bf16.gmra.mxu3 %v975_v26 }
 0x217   : > { %v591_v28 = vpop.f32.mrf.mxu0  ;;  %v760_v29 = vpop.f32.mrf.mxu1 }
 0x218   : > { %v592_v34 = vadd.f32 %v591_v28, %v2375_v56  ;;  %v761_v35 = vadd.f32 %v760_v29, %v2377_v57 }
 0x219   : > { %v1208_v30 = vpop.f32.mrf.mxu2  ;;  %v1377_v31 = vpop.f32.mrf.mxu3 }
 0x21a   : > { %v1209_v32 = vadd.f32 %v2455_v20, %v1208_v30  ;;  %v896_v40 = vmax.f32 %v592_v34, 0.0  ;;  %v897_v43 = vmax.f32 %v761_v35, 0.0 }
 0x21c   : > { %v1378_v33 = vadd.f32 %v1377_v31, %v1209_v32 }
 0x21e   : > { %1493 = vst.msk [vmem:[%s2462_s18 + $0xf0] sm:$0xff] %vm1462_vm3, %v1378_v33 }
 0x21f   : > { %v593_v36 = vpop.f32.mrf.mxu0  ;;  %v762_v37 = vpop.f32.mrf.mxu1 }
 0x220   : > { %v594_v38 = vadd.f32 %v593_v36, %v2375_v56  ;;  %v763_v39 = vadd.f32 %v762_v37, %v2377_v57 }
 0x221   : > { %v1210_v41 = vpop.f32.mrf.mxu2  ;;  %v1379_v42 = vpop.f32.mrf.mxu3 }
 0x222   : > { %v898_v44 = vmax.f32 %v594_v38, 0.0  ;;  %v899_v45 = vmax.f32 %v763_v39, 0.0  ;;  %v1211_v46 = vadd.f32 %v2455_v20, %v1210_v41 }
 0x224   : > { %v976_v47 = vpack.c.bf16 %v898_v44, %v896_v40  ;;  %v977_v48 = vpack.c.bf16 %v899_v45, %v897_v43  ;;  %v1380_v49 = vadd.f32 %v1379_v42, %v1211_v46 }
 0x226   : > { %1494 = vst.msk [vmem:[%s2462_s18 + $0xf8] sm:$0xff] %vm1462_vm3, %v1380_v49  ;;  %1252 = vmatmul.bf16.gmra.mxu2 %v976_v47  ;;  %1421 = vmatmul.bf16.gmra.mxu3 %v977_v48 }
 0x227   : > { %v596_v50 = vpop.f32.mrf.mxu0  ;;  %v765_v51 = vpop.f32.mrf.mxu1 }
 0x228   : > { %v597_v58 = vadd.f32 %v596_v50, %v2375_v56  ;;  %v766_v59 = vadd.f32 %v765_v51, %v2377_v57 }
 0x229   : > { %v1213_v52 = vpop.f32.mrf.mxu2  ;;  %v1382_v53 = vpop.f32.mrf.mxu3 }
 0x22a   : > { %v1214_v54 = vadd.f32 %v2455_v20, %v1213_v52  ;;  %v900_v0 = vmax.f32 %v597_v58, 0.0  ;;  %v901_v3 = vmax.f32 %v766_v59, 0.0 }
 0x22c   : > { %v1383_v55 = vadd.f32 %v1382_v53, %v1214_v54 }
 0x22e   : > { %1495 = vst.msk [vmem:[%s2462_s18 + $0x100] sm:$0xff] %vm1462_vm3, %v1383_v55 }
 0x22f   : > { %v598_v60 = vpop.f32.mrf.mxu0  ;;  %v767_v61 = vpop.f32.mrf.mxu1 }
 0x230   : > { %v599_v62 = vadd.f32 %v598_v60, %v2375_v56  ;;  %v768_v63 = vadd.f32 %v767_v61, %v2377_v57 }
 0x231   : > { %v1215_v1 = vpop.f32.mrf.mxu2  ;;  %v1384_v2 = vpop.f32.mrf.mxu3 }
 0x232   : > { %v902_v4 = vmax.f32 %v599_v62, 0.0  ;;  %v903_v20 = vmax.f32 %v768_v63, 0.0  ;;  %v1216_v6 = vadd.f32 %v2687_v5, %v1215_v1 }
 0x234   : > { %v978_v7 = vpack.c.bf16 %v902_v4, %v900_v0  ;;  %v979_v8 = vpack.c.bf16 %v903_v20, %v901_v3  ;;  %v1385_v9 = vadd.f32 %v1384_v2, %v1216_v6 }
 0x236   : > { %1496 = vst.msk [vmem:[%s2462_s18 + $0x108] sm:$0xff] %vm1462_vm3, %v1385_v9  ;;  %1257 = vmatmul.bf16.gmra.mxu2 %v978_v7  ;;  %1426 = vmatmul.bf16.gmra.mxu3 %v979_v8 }
 0x237   : > { %v601_v10 = vpop.f32.mrf.mxu0  ;;  %v770_v11 = vpop.f32.mrf.mxu1 }
 0x238   : > { %v602_v16 = vadd.f32 %v601_v10, %v2375_v56  ;;  %v771_v17 = vadd.f32 %v770_v11, %v2377_v57 }
 0x239   : > { %v1218_v12 = vpop.f32.mrf.mxu2  ;;  %v1387_v13 = vpop.f32.mrf.mxu3 }
 0x23a   : > { %v1219_v14 = vadd.f32 %v2687_v5, %v1218_v12  ;;  %v904_v23 = vmax.f32 %v602_v16, 0.0  ;;  %v905_v26 = vmax.f32 %v771_v17, 0.0 }
 0x23c   : > { %v1388_v15 = vadd.f32 %v1387_v13, %v1219_v14 }
 0x23e   : > { %1497 = vst.msk [vmem:[%s2462_s18 + $0x110] sm:$0xff] %vm1462_vm3, %v1388_v15 }
 0x23f   : > { %v603_v18 = vpop.f32.mrf.mxu0  ;;  %v772_v19 = vpop.f32.mrf.mxu1 }
 0x240   : > { %v604_v21 = vadd.f32 %v603_v18, %v2375_v56  ;;  %v773_v22 = vadd.f32 %v772_v19, %v2377_v57 }
 0x241   : > { %v1220_v24 = vpop.f32.mrf.mxu2  ;;  %v1389_v25 = vpop.f32.mrf.mxu3 }
 0x242   : > { %v906_v27 = vmax.f32 %v604_v21, 0.0  ;;  %v907_v28 = vmax.f32 %v773_v22, 0.0  ;;  %v1221_v29 = vadd.f32 %v2687_v5, %v1220_v24 }
 0x244   : > { %v980_v30 = vpack.c.bf16 %v906_v27, %v904_v23  ;;  %v981_v31 = vpack.c.bf16 %v907_v28, %v905_v26  ;;  %v1390_v32 = vadd.f32 %v1389_v25, %v1221_v29 }
 0x246   : > { %1498 = vst.msk [vmem:[%s2462_s18 + $0x118] sm:$0xff] %vm1462_vm3, %v1390_v32  ;;  %1262 = vmatmul.bf16.gmra.mxu2 %v980_v30  ;;  %1431 = vmatmul.bf16.gmra.mxu3 %v981_v31 }
 0x247   : > { %v606_v33 = vpop.f32.mrf.mxu0  ;;  %v775_v34 = vpop.f32.mrf.mxu1 }
 0x248   : > { %v607_v39 = vadd.f32 %v606_v33, %v2375_v56  ;;  %v776_v40 = vadd.f32 %v775_v34, %v2377_v57 }
 0x249   : > { %v1223_v35 = vpop.f32.mrf.mxu2  ;;  %v1392_v36 = vpop.f32.mrf.mxu3 }
 0x24a   : > { %v1224_v37 = vadd.f32 %v2687_v5, %v1223_v35  ;;  %v908_v45 = vmax.f32 %v607_v39, 0.0  ;;  %v909_v48 = vmax.f32 %v776_v40, 0.0 }
 0x24c   : > { %v1393_v38 = vadd.f32 %v1392_v36, %v1224_v37 }
 0x24e   : > { %1499 = vst.msk [vmem:[%s2462_s18 + $0x120] sm:$0xff] %vm1462_vm3, %v1393_v38 }
 0x24f   : > { %v608_v41 = vpop.f32.mrf.mxu0  ;;  %v777_v42 = vpop.f32.mrf.mxu1 }
 0x250   : > { %v609_v43 = vadd.f32 %v608_v41, %v2375_v56  ;;  %v778_v44 = vadd.f32 %v777_v42, %v2377_v57 }
 0x251   : > { %v1225_v46 = vpop.f32.mrf.mxu2  ;;  %v1394_v47 = vpop.f32.mrf.mxu3 }
 0x252   : > { %v910_v49 = vmax.f32 %v609_v43, 0.0  ;;  %v911_v50 = vmax.f32 %v778_v44, 0.0  ;;  %v1226_v51 = vadd.f32 %v2687_v5, %v1225_v46 }
 0x254   : > { %v982_v52 = vpack.c.bf16 %v910_v49, %v908_v45  ;;  %v983_v53 = vpack.c.bf16 %v911_v50, %v909_v48  ;;  %v1395_v54 = vadd.f32 %v1394_v47, %v1226_v51 }
 0x256   : > { %1500 = vst.msk [vmem:[%s2462_s18 + $0x128] sm:$0xff] %vm1462_vm3, %v1395_v54  ;;  %1267 = vmatmul.bf16.gmra.mxu2 %v982_v52  ;;  %1436 = vmatmul.bf16.gmra.mxu3 %v983_v53 }
 0x257   : > { %v611_v55 = vpop.f32.mrf.mxu0  ;;  %v780_v58 = vpop.f32.mrf.mxu1 }
 0x258   : > { %v612_v63 = vadd.f32 %v611_v55, %v2375_v56  ;;  %v781_v0 = vadd.f32 %v780_v58, %v2377_v57 }
 0x259   : > { %v1228_v59 = vpop.f32.mrf.mxu2  ;;  %v1397_v60 = vpop.f32.mrf.mxu3 }
 0x25a   : > { %v1229_v61 = vadd.f32 %v2687_v5, %v1228_v59  ;;  %v912_v20 = vmax.f32 %v612_v63, 0.0  ;;  %v913_v8 = vmax.f32 %v781_v0, 0.0 }
 0x25c   : > { %v1398_v62 = vadd.f32 %v1397_v60, %v1229_v61 }
 0x25e   : > { %1501 = vst.msk [vmem:[%s2462_s18 + $0x130] sm:$0xff] %vm1462_vm3, %v1398_v62 }
 0x25f   : > { %v613_v1 = vpop.f32.mrf.mxu0  ;;  %v782_v2 = vpop.f32.mrf.mxu1 }
 0x260   : > { %v614_v3 = vadd.f32 %v613_v1, %v2375_v56  ;;  %v783_v4 = vadd.f32 %v782_v2, %v2377_v57 }
 0x261   : > { %v1230_v6 = vpop.f32.mrf.mxu2  ;;  %v1399_v7 = vpop.f32.mrf.mxu3 }
 0x262   : > { %v914_v9 = vmax.f32 %v614_v3, 0.0  ;;  %v915_v10 = vmax.f32 %v783_v4, 0.0  ;;  %v1231_v11 = vadd.f32 %v2687_v5, %v1230_v6 }
 0x264   : > { %v984_v12 = vpack.c.bf16 %v914_v9, %v912_v20  ;;  %v985_v13 = vpack.c.bf16 %v915_v10, %v913_v8  ;;  %v1400_v14 = vadd.f32 %v1399_v7, %v1231_v11 }
 0x266   : > { %1502 = vst.msk [vmem:[%s2462_s18 + $0x138] sm:$0xff] %vm1462_vm3, %v1400_v14  ;;  %1272 = vmatmul.bf16.gmra.mxu2 %v984_v12  ;;  %1441 = vmatmul.bf16.gmra.mxu3 %v985_v13 }
 0x267   : > { %v616_v15 = vpop.f32.mrf.mxu0  ;;  %v785_v16 = vpop.f32.mrf.mxu1 }
 0x268   : > { %v617_v22 = vadd.f32 %v616_v15, %v2375_v56  ;;  %v786_v23 = vadd.f32 %v785_v16, %v2377_v57 }
 0x269   : > { %v1233_v17 = vpop.f32.mrf.mxu2  ;;  %v1402_v18 = vpop.f32.mrf.mxu3 }
 0x26a   : > { %v1234_v19 = vadd.f32 %v2687_v5, %v1233_v17  ;;  %v916_v28 = vmax.f32 %v617_v22, 0.0  ;;  %v917_v31 = vmax.f32 %v786_v23, 0.0 }
 0x26c   : > { %v1403_v21 = vadd.f32 %v1402_v18, %v1234_v19 }
 0x26e   : > { %1503 = vst.msk [vmem:[%s2462_s18 + $0x140] sm:$0xff] %vm1462_vm3, %v1403_v21 }
 0x26f   : > { %v618_v24 = vpop.f32.mrf.mxu0  ;;  %v787_v25 = vpop.f32.mrf.mxu1 }
 0x270   : > { %v619_v26 = vadd.f32 %v618_v24, %v2375_v56  ;;  %v788_v27 = vadd.f32 %v787_v25, %v2377_v57 }
 0x271   : > { %v1235_v29 = vpop.f32.mrf.mxu2  ;;  %v1404_v30 = vpop.f32.mrf.mxu3 }
 0x272   : > { %v918_v32 = vmax.f32 %v619_v26, 0.0  ;;  %v919_v33 = vmax.f32 %v788_v27, 0.0  ;;  %v1236_v34 = vadd.f32 %v2687_v5, %v1235_v29 }
 0x274   : > { %v986_v35 = vpack.c.bf16 %v918_v32, %v916_v28  ;;  %v987_v36 = vpack.c.bf16 %v919_v33, %v917_v31  ;;  %v1405_v37 = vadd.f32 %v1404_v30, %v1236_v34 }
 0x276   : > { %1504 = vst.msk [vmem:[%s2462_s18 + $0x148] sm:$0xff] %vm1462_vm3, %v1405_v37  ;;  %1277 = vmatmul.bf16.gmra.mxu2 %v986_v35  ;;  %1446 = vmatmul.bf16.gmra.mxu3 %v987_v36 }
 0x277   : > { %v621_v38 = vpop.f32.mrf.mxu0  ;;  %v790_v39 = vpop.f32.mrf.mxu1 }
 0x278   : > { %v622_v44 = vadd.f32 %v621_v38, %v2375_v56  ;;  %v791_v45 = vadd.f32 %v790_v39, %v2377_v57 }
 0x279   : > { %v1238_v40 = vpop.f32.mrf.mxu2  ;;  %v1407_v41 = vpop.f32.mrf.mxu3 }
 0x27a   : > { %v1239_v42 = vadd.f32 %v2687_v5, %v1238_v40  ;;  %v920_v50 = vmax.f32 %v622_v44, 0.0  ;;  %v921_v53 = vmax.f32 %v791_v45, 0.0 }
 0x27c   : > { %v1408_v43 = vadd.f32 %v1407_v41, %v1239_v42 }
 0x27e   : > { %1505 = vst.msk [vmem:[%s2462_s18 + $0x150] sm:$0xff] %vm1462_vm3, %v1408_v43 }
 0x27f   : > { %v623_v46 = vpop.f32.mrf.mxu0  ;;  %v792_v47 = vpop.f32.mrf.mxu1 }
 0x280   : > { %v624_v48 = vadd.f32 %v623_v46, %v2375_v56  ;;  %v793_v49 = vadd.f32 %v792_v47, %v2377_v57 }
 0x281   : > { %v1240_v51 = vpop.f32.mrf.mxu2  ;;  %v1409_v52 = vpop.f32.mrf.mxu3 }
 0x282   : > { %v922_v54 = vmax.f32 %v624_v48, 0.0  ;;  %v923_v55 = vmax.f32 %v793_v49, 0.0  ;;  %v1241_v58 = vadd.f32 %v2687_v5, %v1240_v51 }
 0x284   : > { %v988_v59 = vpack.c.bf16 %v922_v54, %v920_v50  ;;  %v989_v60 = vpack.c.bf16 %v923_v55, %v921_v53  ;;  %v1410_v61 = vadd.f32 %v1409_v52, %v1241_v58 }
 0x286   : > { %1506 = vst.msk [vmem:[%s2462_s18 + $0x158] sm:$0xff] %vm1462_vm3, %v1410_v61  ;;  %1282 = vmatmul.bf16.gmra.mxu2 %v988_v59  ;;  %1451 = vmatmul.bf16.gmra.mxu3 %v989_v60 }
 0x287   : > { %v626_v62 = vpop.f32.mrf.mxu0  ;;  %v795_v63 = vpop.f32.mrf.mxu1 }
 0x288   : > { %v627_v4 = vadd.f32 %v626_v62, %v2375_v56  ;;  %v796_v20 = vadd.f32 %v795_v63, %v2377_v57 }
 0x289   : > { %v1243_v0 = vpop.f32.mrf.mxu2  ;;  %v1412_v1 = vpop.f32.mrf.mxu3 }
 0x28a   : > { %v1244_v2 = vadd.f32 %v2687_v5, %v1243_v0  ;;  %v924_v10 = vmax.f32 %v627_v4, 0.0  ;;  %v925_v13 = vmax.f32 %v796_v20, 0.0 }
 0x28c   : > { %v1413_v3 = vadd.f32 %v1412_v1, %v1244_v2 }
 0x28e   : > { %1507 = vst.msk [vmem:[%s2462_s18 + $0x160] sm:$0xff] %vm1462_vm3, %v1413_v3 }
 0x28f   : > { %v628_v6 = vpop.f32.mrf.mxu0  ;;  %v797_v7 = vpop.f32.mrf.mxu1 }
 0x290   : > { %v629_v8 = vadd.f32 %v628_v6, %v2375_v56  ;;  %v798_v9 = vadd.f32 %v797_v7, %v2377_v57 }
 0x291   : > { %v1245_v11 = vpop.f32.mrf.mxu2  ;;  %v1414_v12 = vpop.f32.mrf.mxu3 }
 0x292   : > { %v926_v14 = vmax.f32 %v629_v8, 0.0  ;;  %v927_v15 = vmax.f32 %v798_v9, 0.0  ;;  %v1246_v16 = vadd.f32 %v2687_v5, %v1245_v11 }
 0x294   : > { %v990_v17 = vpack.c.bf16 %v926_v14, %v924_v10  ;;  %v991_v18 = vpack.c.bf16 %v927_v15, %v925_v13  ;;  %v1415_v19 = vadd.f32 %v1414_v12, %v1246_v16 }
 0x296   : > { %1508 = vst.msk [vmem:[%s2462_s18 + $0x168] sm:$0xff] %vm1462_vm3, %v1415_v19  ;;  %1287 = vmatmul.bf16.gmra.mxu2 %v990_v17  ;;  %1456 = vmatmul.bf16.gmra.mxu3 %v991_v18 }
 0x299   : > { %v1248_v56 = vpop.f32.mrf.mxu2  ;;  %v1417_v57 = vpop.f32.mrf.mxu3 }
 0x29a   : > { %v1249_v21 = vadd.f32 %v2687_v5, %v1248_v56 }
 0x29c   : > { %v1418_v22 = vadd.f32 %v1417_v57, %v1249_v21 }
 0x29e   : > { %1509 = vst.msk [vmem:[%s2462_s18 + $0x170] sm:$0xff] %vm1462_vm3, %v1418_v22 }
 0x2a1   : > { %v1250_v23 = vpop.f32.mrf.mxu2  ;;  %v1419_v24 = vpop.f32.mrf.mxu3 }
 0x2a2   : > { %v1251_v25 = vadd.f32 %v2687_v5, %v1250_v23 }
 0x2a4   : > { %v1420_v26 = vadd.f32 %v1419_v24, %v1251_v25 }
 0x2a6   : > { %1510 = vst.msk [vmem:[%s2462_s18 + $0x178] sm:$0xff] %vm1462_vm3, %v1420_v26 }
 0x2a9   : > { %v1253_v27 = vpop.f32.mrf.mxu2  ;;  %v1422_v28 = vpop.f32.mrf.mxu3 }
 0x2aa   : > { %v1254_v29 = vadd.f32 %v2687_v5, %v1253_v27 }
 0x2ac   : > { %v1423_v30 = vadd.f32 %v1422_v28, %v1254_v29 }
 0x2ae   : > { %1511 = vst.msk [vmem:[%s2462_s18 + $0x180] sm:$0xff] %vm1462_vm3, %v1423_v30 }
 0x2b1   : > { %v1255_v31 = vpop.f32.mrf.mxu2  ;;  %v1424_v32 = vpop.f32.mrf.mxu3 }
 0x2b2   : > { %v1256_v33 = vadd.f32 %v2687_v5, %v1255_v31 }
 0x2b4   : > { %v1425_v34 = vadd.f32 %v1424_v32, %v1256_v33 }
 0x2b6   : > { %1512 = vst.msk [vmem:[%s2462_s18 + $0x188] sm:$0xff] %vm1462_vm3, %v1425_v34 }
 0x2b9   : > { %v1258_v35 = vpop.f32.mrf.mxu2  ;;  %v1427_v36 = vpop.f32.mrf.mxu3 }
 0x2ba   : > { %v1259_v37 = vadd.f32 %v2687_v5, %v1258_v35 }
 0x2bc   : > { %v1428_v38 = vadd.f32 %v1427_v36, %v1259_v37 }
 0x2be   : > { %1513 = vst.msk [vmem:[%s2462_s18 + $0x190] sm:$0xff] %vm1462_vm3, %v1428_v38 }
 0x2c1   : > { %v1260_v39 = vpop.f32.mrf.mxu2  ;;  %v1429_v40 = vpop.f32.mrf.mxu3 }
 0x2c2   : > { %v1261_v41 = vadd.f32 %v2687_v5, %v1260_v39 }
 0x2c4   : > { %v1430_v42 = vadd.f32 %v1429_v40, %v1261_v41 }
 0x2c6   : > { %1514 = vst.msk [vmem:[%s2462_s18 + $0x198] sm:$0xff] %vm1462_vm3, %v1430_v42 }
 0x2c9   : > { %v1263_v43 = vpop.f32.mrf.mxu2  ;;  %v1432_v44 = vpop.f32.mrf.mxu3 }
 0x2ca   : > { %v1264_v45 = vadd.f32 %v2687_v5, %v1263_v43 }
 0x2cc   : > { %v1433_v46 = vadd.f32 %v1432_v44, %v1264_v45 }
 0x2ce   : > { %1515 = vst.msk [vmem:[%s2462_s18 + $0x1a0] sm:$0xff] %vm1462_vm3, %v1433_v46 }
 0x2d1   : > { %v1265_v47 = vpop.f32.mrf.mxu2  ;;  %v1434_v48 = vpop.f32.mrf.mxu3 }
 0x2d2   : > { %v1266_v49 = vadd.f32 %v2687_v5, %v1265_v47 }
 0x2d4   : > { %v1435_v50 = vadd.f32 %v1434_v48, %v1266_v49 }
 0x2d6   : > { %1516 = vst.msk [vmem:[%s2462_s18 + $0x1a8] sm:$0xff] %vm1462_vm3, %v1435_v50 }
 0x2d9   : > { %v1268_v51 = vpop.f32.mrf.mxu2  ;;  %v1437_v52 = vpop.f32.mrf.mxu3 }
 0x2da   : > { %v1269_v53 = vadd.f32 %v2687_v5, %v1268_v51 }
 0x2dc   : > { %v1438_v54 = vadd.f32 %v1437_v52, %v1269_v53 }
 0x2de   : > { %1517 = vst.msk [vmem:[%s2462_s18 + $0x1b0] sm:$0xff] %vm1462_vm3, %v1438_v54 }
 0x2e1   : > { %v1270_v55 = vpop.f32.mrf.mxu2  ;;  %v1439_v58 = vpop.f32.mrf.mxu3 }
 0x2e2   : > { %v1271_v59 = vadd.f32 %v2687_v5, %v1270_v55 }
 0x2e4   : > { %v1440_v60 = vadd.f32 %v1439_v58, %v1271_v59 }
 0x2e6   : > { %1518 = vst.msk [vmem:[%s2462_s18 + $0x1b8] sm:$0xff] %vm1462_vm3, %v1440_v60 }
 0x2e9   : > { %v1273_v61 = vpop.f32.mrf.mxu2  ;;  %v1442_v62 = vpop.f32.mrf.mxu3 }
 0x2ea   : > { %v1274_v63 = vadd.f32 %v2687_v5, %v1273_v61 }
 0x2ec   : > { %v1443_v0 = vadd.f32 %v1442_v62, %v1274_v63 }
 0x2ee   : > { %1519 = vst.msk [vmem:[%s2462_s18 + $0x1c0] sm:$0xff] %vm1462_vm3, %v1443_v0 }
 0x2f1   : > { %v1275_v1 = vpop.f32.mrf.mxu2  ;;  %v1444_v2 = vpop.f32.mrf.mxu3 }
 0x2f2   : > { %v1276_v3 = vadd.f32 %v2687_v5, %v1275_v1 }
 0x2f4   : > { %v1445_v4 = vadd.f32 %v1444_v2, %v1276_v3 }
 0x2f6   : > { %1520 = vst.msk [vmem:[%s2462_s18 + $0x1c8] sm:$0xff] %vm1462_vm3, %v1445_v4 }
 0x2f9   : > { %v1278_v20 = vpop.f32.mrf.mxu2  ;;  %v1447_v6 = vpop.f32.mrf.mxu3 }
 0x2fa   : > { %v1279_v7 = vadd.f32 %v2687_v5, %v1278_v20 }
 0x2fc   : > { %v1448_v8 = vadd.f32 %v1447_v6, %v1279_v7 }
 0x2fe   : > { %1521 = vst.msk [vmem:[%s2462_s18 + $0x1d0] sm:$0xff] %vm1462_vm3, %v1448_v8 }
 0x301   : > { %v1280_v9 = vpop.f32.mrf.mxu2  ;;  %v1449_v10 = vpop.f32.mrf.mxu3 }
 0x302   : > { %v1281_v11 = vadd.f32 %v2687_v5, %v1280_v9 }
 0x304   : > { %v1450_v12 = vadd.f32 %v1449_v10, %v1281_v11 }
 0x306   : > { %1522 = vst.msk [vmem:[%s2462_s18 + $0x1d8] sm:$0xff] %vm1462_vm3, %v1450_v12 }
 0x309   : > { %v1283_v13 = vpop.f32.mrf.mxu2  ;;  %v1452_v14 = vpop.f32.mrf.mxu3 }
 0x30a   : > { %v1284_v15 = vadd.f32 %v2687_v5, %v1283_v13 }
 0x30c   : > { %v1453_v16 = vadd.f32 %v1452_v14, %v1284_v15 }
 0x30e   : > { %1523 = vst.msk [vmem:[%s2462_s18 + $0x1e0] sm:$0xff] %vm1462_vm3, %v1453_v16 }
 0x311   : > { %v1285_v17 = vpop.f32.mrf.mxu2  ;;  %v1454_v18 = vpop.f32.mrf.mxu3 }
 0x312   : > { %v1286_v19 = vadd.f32 %v2687_v5, %v1285_v17 }
 0x314   : > { %v1455_v56 = vadd.f32 %v1454_v18, %v1286_v19 }
 0x316   : > { %1524 = vst.msk [vmem:[%s2462_s18 + $0x1e8] sm:$0xff] %vm1462_vm3, %v1455_v56 }
 0x319   : > { %v1288_v57 = vpop.f32.mrf.mxu2  ;;  %v1457_v21 = vpop.f32.mrf.mxu3 }
 0x31a   : > { %v1289_v22 = vadd.f32 %v2687_v5, %v1288_v57 }
 0x31c   : > { %v1458_v23 = vadd.f32 %v1457_v21, %v1289_v22 }
 0x31e   : > { %1525 = vst.msk [vmem:[%s2462_s18 + $0x1f0] sm:$0xff] %vm1462_vm3, %v1458_v23 }
 0x321   : > { %v1290_v24 = vpop.f32.mrf.mxu2  ;;  %v1459_v26 = vpop.f32.mrf.mxu3 }
 0x322   : > { %v1291_v25 = vadd.f32 %v2687_v5, %v1290_v24  ;;  %1533 = sbr.rel (!%p2273_p4) target bundleno = 871 (0x367), region = 44 }
 0x324   : > { %v1460_v27 = vadd.f32 %v1459_v26, %v1291_v25 }
 0x326   : > { %1526 = vst.msk [vmem:[%s2462_s18 + $0x1f8] sm:$0xff] %vm1462_vm3, %v1460_v27 }
 0x327   : > { %s2964_s15 = smov (!%p1536_p8, %s1535_s15), 64 }
 0x328   : > { %s2004_s24 = sshll.u32 %s2964_s15, 3 }
 0x329   : > { %p2007_p9 = scmp.eq.s32.totalorder %s2004_s24, 0 }
 0x32a   : > { %s2819_s27 = sshrl.u32 (!%p2007_p9), %s2964_s15, 5 }
 0x32b   : > { %1544 = sbr.rel (%p2007_p9) target bundleno = 871 (0x367), region = 48  ;;  %p2008_p10 = scmp.le.s32.totalorder (!%p2007_p9), %s2819_s27, 0 }
 0x330   : > { %1823 = sbr.rel (%p2008_p10) target bundleno = 854 (0x356), region = 124  ;;  %s2955_s21 = smov (!%p2008_p10), %s2813_s23 }
 0x331   : > { %s2956_s26 = smov (!%p2008_p10), %s2462_s18  ;;  %s2828_s29 = smov (!%p2008_p10), 0  }
 0x332   : > { %s2830_s28 = smov (!%p2008_p10), 0  }
 0x335 LB: >> { %v1669_v5 = vld [vmem:[%s2191_s26] sm:$0xff]  ;;  %v1671_v28 = vld [vmem:[%s2191_s26 + $0x8] sm:$0xff]  ;;  %v1673_v29 = vld [vmem:[%s2191_s26 + $0x10] sm:$0xff]  ;;  %s1733_s30 = sadd.s32 1, %s2195_s29  ;;  %s1663_s28 = sadd.s32 1, %s2199_s28   ;;  %s2199_s28 = sphi %s2830_s28, %s1663_s28   ;;  %s2195_s29 = sphi %s2828_s29, %s2959_s29   ;;  %s2191_s26 = sphi %s2956_s26, %s2958_s26   ;;  %s2187_s21 = sphi %s2955_s21, %s2957_s21  }
 0x336   : >> { %1670 = vst [vmem:[%s2187_s21] sm:$0xff] %v1669_v5  ;;  %v1675_v30 = vld [vmem:[%s2191_s26 + $0x18] sm:$0xff]  ;;  %p1734_p11 = scmp.ge.s32.totalorder %s1733_s30, %s2819_s27  ;;  %v1677_v31 = vld [vmem:[%s2191_s26 + $0x20] sm:$0xff]  ;;  %v1679_v32 = vld [vmem:[%s2191_s26 + $0x28] sm:$0xff]  ;;  %p1662_p12 = scmp.ge.s32.totalorder %s1663_s28, %s2819_s27 }
 0x337   : >> { %1672 = vst [vmem:[%s2187_s21 + $0x8] sm:$0xff] %v1671_v28  ;;  %v1681_v33 = vld [vmem:[%s2191_s26 + $0x30] sm:$0xff]  ;;  %v1683_v34 = vld [vmem:[%s2191_s26 + $0x38] sm:$0xff]  ;;  %v1685_v35 = vld [vmem:[%s2191_s26 + $0x40] sm:$0xff] }
 0x338   : >> { %1674 = vst [vmem:[%s2187_s21 + $0x10] sm:$0xff] %v1673_v29  ;;  %s2966_s30 = smov (%p1734_p11, %s1733_s30), 0  ;;  %v1687_v36 = vld [vmem:[%s2191_s26 + $0x48] sm:$0xff]  ;;  %v1689_v37 = vld [vmem:[%s2191_s26 + $0x50] sm:$0xff]  ;;  %v1691_v38 = vld [vmem:[%s2191_s26 + $0x58] sm:$0xff] }
 0x339   : >> { %1676 = vst [vmem:[%s2187_s21 + $0x18] sm:$0xff] %v1675_v30  ;;  %s2009_s6 = sshll.u32 %s2966_s30, 8  ;;  %v1693_v39 = vld [vmem:[%s2191_s26 + $0x60] sm:$0xff]  ;;  %v1695_v40 = vld [vmem:[%s2191_s26 + $0x68] sm:$0xff]  ;;  %v1697_v41 = vld [vmem:[%s2191_s26 + $0x70] sm:$0xff]  ;;  %s2959_s29 = smov %s2966_s30 }
 0x33a   : >> { %1678 = vst [vmem:[%s2187_s21 + $0x20] sm:$0xff] %v1677_v31  ;;  %s2862_s7 = scalar_lea.vmem %s2462_s18, %s2009_s6 [#allocation2]   ;;  %s2865_s8 = scalar_lea.vmem %s2813_s23, %s2009_s6   ;;  %v1699_v42 = vld [vmem:[%s2191_s26 + $0x78] sm:$0xff]  ;;  %v1701_v43 = vld [vmem:[%s2191_s26 + $0x80] sm:$0xff]  ;;  %v1703_v44 = vld [vmem:[%s2191_s26 + $0x88] sm:$0xff] }
 0x33b   : >> { %1680 = vst [vmem:[%s2187_s21 + $0x28] sm:$0xff] %v1679_v32  ;;  %v1705_v45 = vld [vmem:[%s2191_s26 + $0x90] sm:$0xff]  ;;  %v1707_v46 = vld [vmem:[%s2191_s26 + $0x98] sm:$0xff]  ;;  %v1709_v47 = vld [vmem:[%s2191_s26 + $0xa0] sm:$0xff] }
 0x33c   : >> { %1682 = vst [vmem:[%s2187_s21 + $0x30] sm:$0xff] %v1681_v33  ;;  %v1711_v48 = vld [vmem:[%s2191_s26 + $0xa8] sm:$0xff]  ;;  %v1713_v49 = vld [vmem:[%s2191_s26 + $0xb0] sm:$0xff]  ;;  %v1715_v50 = vld [vmem:[%s2191_s26 + $0xb8] sm:$0xff] }
 0x33d   : >> { %1684 = vst [vmem:[%s2187_s21 + $0x38] sm:$0xff] %v1683_v34  ;;  %v1717_v51 = vld [vmem:[%s2191_s26 + $0xc0] sm:$0xff]  ;;  %v1719_v52 = vld [vmem:[%s2191_s26 + $0xc8] sm:$0xff]  ;;  %v1721_v53 = vld [vmem:[%s2191_s26 + $0xd0] sm:$0xff] }
 0x33e   : >> { %1686 = vst [vmem:[%s2187_s21 + $0x40] sm:$0xff] %v1685_v35  ;;  %v1723_v54 = vld [vmem:[%s2191_s26 + $0xd8] sm:$0xff]  ;;  %v1725_v55 = vld [vmem:[%s2191_s26 + $0xe0] sm:$0xff]  ;;  %v1727_v58 = vld [vmem:[%s2191_s26 + $0xe8] sm:$0xff] }
 0x33f   : >> { %1688 = vst [vmem:[%s2187_s21 + $0x48] sm:$0xff] %v1687_v36  ;;  %v1729_v59 = vld [vmem:[%s2191_s26 + $0xf0] sm:$0xff]  ;;  %v1731_v60 = vld [vmem:[%s2191_s26 + $0xf8] sm:$0xff]  ;;  %s2958_s26 = smov %s2862_s7 }
 0x340   : >> { %1690 = vst [vmem:[%s2187_s21 + $0x50] sm:$0xff] %v1689_v37 }
 0x341   : >> { %1692 = vst [vmem:[%s2187_s21 + $0x58] sm:$0xff] %v1691_v38 }
 0x342   : >> { %1694 = vst [vmem:[%s2187_s21 + $0x60] sm:$0xff] %v1693_v39 }
 0x343   : >> { %1696 = vst [vmem:[%s2187_s21 + $0x68] sm:$0xff] %v1695_v40 }
 0x344   : >> { %1698 = vst [vmem:[%s2187_s21 + $0x70] sm:$0xff] %v1697_v41 }
 0x345   : >> { %1700 = vst [vmem:[%s2187_s21 + $0x78] sm:$0xff] %v1699_v42 }
 0x346   : >> { %1702 = vst [vmem:[%s2187_s21 + $0x80] sm:$0xff] %v1701_v43 }
 0x347   : >> { %1704 = vst [vmem:[%s2187_s21 + $0x88] sm:$0xff] %v1703_v44 }
 0x348   : >> { %1706 = vst [vmem:[%s2187_s21 + $0x90] sm:$0xff] %v1705_v45 }
 0x349   : >> { %1708 = vst [vmem:[%s2187_s21 + $0x98] sm:$0xff] %v1707_v46 }
 0x34a   : >> { %1710 = vst [vmem:[%s2187_s21 + $0xa0] sm:$0xff] %v1709_v47 }
 0x34b   : >> { %1712 = vst [vmem:[%s2187_s21 + $0xa8] sm:$0xff] %v1711_v48 }
 0x34c   : >> { %1714 = vst [vmem:[%s2187_s21 + $0xb0] sm:$0xff] %v1713_v49 }
 0x34d   : >> { %1716 = vst [vmem:[%s2187_s21 + $0xb8] sm:$0xff] %v1715_v50 }
 0x34e   : >> { %1718 = vst [vmem:[%s2187_s21 + $0xc0] sm:$0xff] %v1717_v51 }
 0x34f   : >> { %1720 = vst [vmem:[%s2187_s21 + $0xc8] sm:$0xff] %v1719_v52 }
 0x350   : >> { %1722 = vst [vmem:[%s2187_s21 + $0xd0] sm:$0xff] %v1721_v53 }
 0x351   : >> { %1724 = vst [vmem:[%s2187_s21 + $0xd8] sm:$0xff] %v1723_v54  ;;  %1665 = sbr.rel (!%p1662_p12) target bundleno = 821 (0x335), region = 130 }
 0x352   : >> { %1726 = vst [vmem:[%s2187_s21 + $0xe0] sm:$0xff] %v1725_v55 }
 0x353   : >> { %1728 = vst [vmem:[%s2187_s21 + $0xe8] sm:$0xff] %v1727_v58 }
 0x354   : >> { %1730 = vst [vmem:[%s2187_s21 + $0xf0] sm:$0xff] %v1729_v59 }
 0x355   : >> { %1732 = vst [vmem:[%s2187_s21 + $0xf8] sm:$0xff] %v1731_v60  ;;  %s2957_s21 = smov %s2865_s8 }
 0x356 PF: > { %s2930_s10 = sand.u32 31, %s2964_s15   ;;  %s2036_s11 = sshll.u32 %s2819_s27, 8 }
 0x357   : > { %s1744_s12 = scalar_lea.vmem %s2462_s18, %s2036_s11 [#allocation2]   ;;  %s1746_s13 = scalar_lea.vmem %s2813_s23, %s2036_s11  }
 0x358   : > { %p2014_p13 = scmp.le.s32.totalorder %s2930_s10, 0 }
 0x359   : > { %s2201_s9 = smov (!%p2014_p13), %s1746_s13   ;;  %s2205_s14 = smov (!%p2014_p13), %s1744_s12  }
 0x35a   : > { %1837 = sbr.rel (%p2014_p13) target bundleno = 871 (0x367), region = 135  ;;  %s2209_s16 = smov (!%p2014_p13), 0  }
 0x35b   : > { %s2213_s17 = smov (!%p2014_p13), 0  }
 0x35f LB: >> { %v1756_v61 = vld [vmem:[%s2207_s14] sm:$0xff]  ;;  %s1758_s15 = sadd.s32 1, %s2211_s16  ;;  %s1750_s17 = sadd.s32 1, %s2215_s17   ;;  %s2215_s17 = sphi %s2213_s17, %s1750_s17   ;;  %s2211_s16 = sphi %s2209_s16, %s2210_s16   ;;  %s2207_s14 = sphi %s2205_s14, %s1763_s14   ;;  %s2203_s9 = sphi %s2201_s9, %s1764_s9  }
 0x360   : >> { %1757 = vst [vmem:[%s2203_s9] sm:$0xff] %v1756_v61  ;;  %p1759_p0 = scmp.ge.s32.totalorder %s1758_s15, %s2930_s10  ;;  %p1749_p1 = scmp.ge.s32.totalorder %s1750_s17, %s2930_s10 }
 0x362   : >> { %s2968_s15 = smov (%p1759_p0, %s1758_s15), 0  ;;  %1752 = sbr.rel (!%p1749_p1) target bundleno = 863 (0x35f), region = 141 }
 0x363   : >> { %s2015_s18 = sshll.u32 %s2968_s15, 3  ;;  %s2210_s16 = smov %s2968_s15  }
 0x364   : >> { %s1763_s14 = scalar_lea.vmem %s1744_s12, %s2015_s18 [#allocation2]   ;;  %s1764_s9 = scalar_lea.vmem %s1746_s13, %s2015_s18  }
 0x367 PF: > { %p12_p2 = scmp.ge.s32.totalorder %s2263_s22, 4   ;;  %s2960_s18 = smov %s2179_s19 }
 0x368   : > { %s2961_s19 = smov %s2271_s25  ;;  %s2962_s20 = smov %s2263_s22 }
 0x369   :  { %14 = sbr.rel (!%p12_p2) target bundleno = 2 (0x2), region = 152 }

</bundles_post_ra>
